<compile_context>
chip_gen: v7x
topology: tpu7x:2x2x1
jax: 0.10.0
libtpu: 0.0.40
codegen_flags: <defaults>
</compile_context>

<pallas_src>
import functools
import math

import numpy as np
import jax
import jax.numpy as jnp
from jax.experimental import pallas as pl
from jax.experimental.pallas import tpu as pltpu


def _gelu_exact(x):
    # PyTorch nn.GELU() default = exact erf formulation.
    return 0.5 * x * (1.0 + jax.lax.erf(x * (1.0 / math.sqrt(2.0))))


def _patch_downsample_kernel(*refs, H, W, scale, has_token):
    if has_token:
        x_ref, wconv_ref, bconv_ref, wtok_ref, patch_out_ref, tok_out_ref = refs
    else:
        x_ref, wconv_ref, bconv_ref, patch_out_ref = refs
        wtok_ref = tok_out_ref = None

    Bt, _, Cin = x_ref.shape          # (block_b, has_token + H*W, Cin)
    Cout = wconv_ref.shape[-1]
    Ho, Wo = H // scale, W // scale
    P = Ho * Wo

    # Strided conv (kernel == stride == scale, padding 0) as scale*scale
    # accumulated matmuls:  y = sum_{di,dj} x[:, di::s, dj::s, :] @ w[di, dj].
    # The (di, dj) tap of every patch is gathered with static strided slices of
    # the input ref (per output row i the columns j*s + dj form one stride-s
    # slice), so the rearrange stays entirely on-chip.
    acc = None
    for di in range(scale):
        for dj in range(scale):
            taps = []
            for i in range(Ho):
                start = has_token + (i * scale + di) * W + dj
                if scale == 1:
                    sl = pl.ds(start, Wo)
                else:
                    sl = pl.ds(start, Wo, stride=scale)
                taps.append(x_ref[:, sl, :])                 # (Bt, Wo, Cin)
            sub = taps[0] if len(taps) == 1 else jnp.concatenate(taps, axis=1)
            sub = sub.reshape(Bt * P, Cin)                   # (Bt*P, Cin)
            part = jnp.dot(sub, wconv_ref[di * scale + dj],
                           preferred_element_type=jnp.float32)
            acc = part if acc is None else acc + part        # f32 accumulation

    y = _gelu_exact(acc + bconv_ref[...])                    # bias + exact GELU
    patch_out_ref[...] = y.reshape(Bt, P, Cout).astype(patch_out_ref.dtype)

    if has_token:
        tok = jnp.dot(x_ref[:, 0, :], wtok_ref[...],
                      preferred_element_type=jnp.float32)    # (Bt, Cout)
        tok_out_ref[:, 0, :] = tok.astype(tok_out_ref.dtype)


def _choose_block_b(B, N, P, Cin, Cout, K, itemsize,
                    vmem_budget_bytes=16 * 1024 * 1024):
    """Largest batch tile that divides B and fits a conservative VMEM budget
    (sized with v7x's 64 MiB physical VMEM in mind), preferring >= 2 grid
    steps so both v7x TensorCores get work."""
    divisors = [d for d in range(1, B + 1) if B % d == 0]

    def vmem_estimate(d):
        io = 2 * d * N * Cin * itemsize                  # double-buffered input block
        io += 2 * d * (P + 1) * Cout * itemsize          # double-buffered output blocks
        w = 2 * (K * Cout + Cin * Cout + Cout) * itemsize
        tmp = d * P * (Cin + 2 * Cout) * 4               # f32 sub/acc/epilogue temps
        return io + w + tmp

    fitting = [d for d in divisors if vmem_estimate(d) <= vmem_budget_bytes] or [1]
    bt = max(fitting)
    if bt == B and B > 1:
        smaller = [d for d in fitting if d < B]
        if smaller:
            bt = max(smaller)
    return bt


def patch_downsample(x, conv_w, conv_b, tok_w, feat_size, scale=2, has_token=1,
                     block_b=None):
    """x: (B, has_token + H*W, in_dim) -> (B, has_token + Ho*Wo, out_dim)."""
    has_token = int(has_token)
    if has_token not in (0, 1):
        raise ValueError("has_token must be False/0 or True/1")
    B, N, Cin = x.shape
    H, W = feat_size
    if H % scale or W % scale:
        raise ValueError("feat_size must be divisible by scale")
    if N != has_token + H * W:
        raise ValueError("x.shape[1] != has_token + H*W")
    Cout = conv_w.shape[0]
    Ho, Wo = H // scale, W // scale
    P = Ho * Wo
    K = scale * scale * Cin

    # torch Conv2d weight (Cout, Cin, kh, kw) -> per-tap weights (kh*kw, Cin, Cout);
    # torch Linear weight (Cout, Cin) -> (Cin, Cout).  (Tiny; done once in XLA.)
    wconv = jnp.transpose(conv_w, (2, 3, 1, 0)).reshape(scale * scale, Cin, Cout)
    bconv = conv_b.reshape(1, Cout)

    if block_b is None:
        block_b = _choose_block_b(B, N, P, Cin, Cout, K, x.dtype.itemsize)
    if B % block_b:
        raise ValueError("block_b must divide the batch size")

    kernel = functools.partial(_patch_downsample_kernel,
                               H=H, W=W, scale=scale, has_token=has_token)

    in_arrays = [x, wconv, bconv]
    in_specs = [
        pl.BlockSpec((block_b, N, Cin), lambda b: (b, 0, 0)),
        pl.BlockSpec((scale * scale, Cin, Cout), lambda b: (0, 0, 0)),
        pl.BlockSpec((1, Cout), lambda b: (0, 0)),
    ]
    # Separate outputs keep the big patch store 8-sublane aligned (a shared
    # [token, patches] output would shift the patch block to sublane offset 1).
    out_shape = [jax.ShapeDtypeStruct((B, P, Cout), x.dtype)]
    out_specs = [pl.BlockSpec((block_b, P, Cout), lambda b: (b, 0, 0))]
    if has_token:
        in_arrays.append(jnp.transpose(tok_w))           # (Cin, Cout)
        in_specs.append(pl.BlockSpec((Cin, Cout), lambda b: (0, 0)))
        out_shape.append(jax.ShapeDtypeStruct((B, 1, Cout), x.dtype))
        out_specs.append(pl.BlockSpec((block_b, 1, Cout), lambda b: (b, 0, 0)))

    outs = pl.pallas_call(
        kernel,
        out_shape=out_shape,
        grid=(B // block_b,),
        in_specs=in_specs,
        out_specs=out_specs,
        compiler_params=pltpu.CompilerParams(
            dimension_semantics=("parallel",),
            # blocks are budgeted to ~16 MiB by _choose_block_b, safe for
            # v7x's 64 MiB physical VMEM; 32 MiB scoped gives headroom on v5e.
            vmem_limit_bytes=32 * 1024 * 1024),
    )(*in_arrays)

    if has_token:
        patch_out, tok_out = outs
        return jnp.concatenate([tok_out, patch_out], axis=1)
    return outs[0]


def _reference(x, conv_w, conv_b, tok_w, feat_size, scale=2, has_token=1):
    """Pure-JAX reference mirroring the PyTorch forward (lax.conv, NCHW)."""
    B, _, Cin = x.shape
    H, W = feat_size
    Cout = conv_w.shape[0]
    token = x[:, :has_token]
    img = x[:, has_token:].reshape(B, H, W, Cin).transpose(0, 3, 1, 2)  # NCHW
    y = jax.lax.conv_general_dilated(
        img, conv_w, window_strides=(scale, scale), padding='VALID',
        dimension_numbers=('NCHW', 'OIHW', 'NCHW'),
        precision=jax.lax.Precision.HIGHEST)
    y = y + conv_b[None, :, None, None]
    y = _gelu_exact(y)
    y = y.reshape(B, Cout, -1).transpose(0, 2, 1)
    if has_token:
        tok = jnp.einsum('bnc,oc->bno', token, tok_w,
                         precision=jax.lax.Precision.HIGHEST)
        return jnp.concatenate([tok, y], axis=1)
    return y


if __name__ == "__main__":
    B, in_dim, out_dim, scale = 8, 128, 256, 2
    feat_size = (16, 16)
    has_token = 1
    H, W = feat_size
    N = has_token + H * W

    key = jax.random.PRNGKey(0)
    k1, k2, k3, k4 = jax.random.split(key, 4)
    conv_w = jax.random.normal(k1, (out_dim, in_dim, scale, scale), jnp.float32) * 0.05
    conv_b = jax.random.normal(k2, (out_dim,), jnp.float32) * 0.05
    tok_w = jax.random.normal(k3, (out_dim, in_dim), jnp.float32) * 0.05
    x = jax.random.normal(k4, (B, N, in_dim), jnp.float32)

    out = patch_downsample(x, conv_w, conv_b, tok_w, feat_size,
                           scale=scale, has_token=has_token)
    out = jax.block_until_ready(out)

    ref = jax.block_until_ready(
        _reference(x, conv_w, conv_b, tok_w, feat_size,
                   scale=scale, has_token=has_token))

    assert out.shape == (B, has_token + (H // scale) * (W // scale), out_dim), out.shape
    np.testing.assert_allclose(np.asarray(out), np.asarray(ref), rtol=2e-5, atol=2e-5)

    print("KERNEL_OK")
</pallas_src>

<mosaic_0001>
module attributes {stable_mosaic.version = 11 : i64} {
  func.func @_patch_downsample_kernel(%arg0: i32, %arg1: memref<4x257x128xf32, #tpu.memory_space<vmem>>, %arg2: memref<4x128x256xf32, #tpu.memory_space<vmem>>, %arg3: memref<1x256xf32, #tpu.memory_space<vmem>>, %arg4: memref<128x256xf32, #tpu.memory_space<vmem>>, %arg5: memref<4x64x256xf32, #tpu.memory_space<vmem>>, %arg6: memref<4x1x256xf32, #tpu.memory_space<vmem>>) attributes {dimension_semantics = [#tpu.dimension_semantics<parallel>], iteration_bounds = array<i64: 2>, scalar_prefetch = 0 : i64, scratch_operands = 0 : i64, tpu.core_type = #tpu.core_type<tc>, window_params = [{transform_indices = @transform_0, window_bounds = array<i64: 4, 257, 128>}, {pipeline_mode = #tpu.pipeline_mode<synchronous>, transform_indices = @transform_1, window_bounds = array<i64: 4, 128, 256>}, {pipeline_mode = #tpu.pipeline_mode<synchronous>, transform_indices = @transform_2, window_bounds = array<i64: 1, 256>}, {pipeline_mode = #tpu.pipeline_mode<synchronous>, transform_indices = @transform_3, window_bounds = array<i64: 128, 256>}, {transform_indices = @transform_4, window_bounds = array<i64: 4, 64, 256>}, {transform_indices = @transform_5, window_bounds = array<i64: 4, 1, 256>}]} {
    %c0 = arith.constant 0 : index
    %c1 = arith.constant 1 : index
    %c0_0 = arith.constant 0 : index
    %0 = tpu.strided_load %arg1[%c0, %c1, %c0_0] {strides = array<i32: 1, 2, 1>} : memref<4x257x128xf32, #tpu.memory_space<vmem>>, vector<4x8x128xf32>
    %c0_1 = arith.constant 0 : index
    %c33 = arith.constant 33 : index
    %c0_2 = arith.constant 0 : index
    %1 = tpu.strided_load %arg1[%c0_1, %c33, %c0_2] {strides = array<i32: 1, 2, 1>} : memref<4x257x128xf32, #tpu.memory_space<vmem>>, vector<4x8x128xf32>
    %c0_3 = arith.constant 0 : index
    %c65 = arith.constant 65 : index
    %c0_4 = arith.constant 0 : index
    %2 = tpu.strided_load %arg1[%c0_3, %c65, %c0_4] {strides = array<i32: 1, 2, 1>} : memref<4x257x128xf32, #tpu.memory_space<vmem>>, vector<4x8x128xf32>
    %c0_5 = arith.constant 0 : index
    %c97 = arith.constant 97 : index
    %c0_6 = arith.constant 0 : index
    %3 = tpu.strided_load %arg1[%c0_5, %c97, %c0_6] {strides = array<i32: 1, 2, 1>} : memref<4x257x128xf32, #tpu.memory_space<vmem>>, vector<4x8x128xf32>
    %c0_7 = arith.constant 0 : index
    %c129 = arith.constant 129 : index
    %c0_8 = arith.constant 0 : index
    %4 = tpu.strided_load %arg1[%c0_7, %c129, %c0_8] {strides = array<i32: 1, 2, 1>} : memref<4x257x128xf32, #tpu.memory_space<vmem>>, vector<4x8x128xf32>
    %c0_9 = arith.constant 0 : index
    %c161 = arith.constant 161 : index
    %c0_10 = arith.constant 0 : index
    %5 = tpu.strided_load %arg1[%c0_9, %c161, %c0_10] {strides = array<i32: 1, 2, 1>} : memref<4x257x128xf32, #tpu.memory_space<vmem>>, vector<4x8x128xf32>
    %c0_11 = arith.constant 0 : index
    %c193 = arith.constant 193 : index
    %c0_12 = arith.constant 0 : index
    %6 = tpu.strided_load %arg1[%c0_11, %c193, %c0_12] {strides = array<i32: 1, 2, 1>} : memref<4x257x128xf32, #tpu.memory_space<vmem>>, vector<4x8x128xf32>
    %c0_13 = arith.constant 0 : index
    %c225 = arith.constant 225 : index
    %c0_14 = arith.constant 0 : index
    %7 = tpu.strided_load %arg1[%c0_13, %c225, %c0_14] {strides = array<i32: 1, 2, 1>} : memref<4x257x128xf32, #tpu.memory_space<vmem>>, vector<4x8x128xf32>
    %8 = tpu.concatenate %0, %1, %2, %3, %4, %5, %6, %7 in 1 : vector<4x8x128xf32>, vector<4x8x128xf32>, vector<4x8x128xf32>, vector<4x8x128xf32>, vector<4x8x128xf32>, vector<4x8x128xf32>, vector<4x8x128xf32>, vector<4x8x128xf32> -> vector<4x64x128xf32>
    %9 = vector.shape_cast %8 : vector<4x64x128xf32> to vector<256x128xf32>
    %c0_15 = arith.constant 0 : index
    %c0_16 = arith.constant 0 : index
    %c0_17 = arith.constant 0 : index
    %10 = vector.load %arg2[%c0_15, %c0_16, %c0_17] : memref<4x128x256xf32, #tpu.memory_space<vmem>>, vector<1x128x256xf32>
    %11 = vector.shape_cast %10 : vector<1x128x256xf32> to vector<128x256xf32>
    %cst = arith.constant dense<0.000000e+00> : vector<256x256xf32>
    %12 = tpu.matmul %9, %11, %cst {dimension_numbers = #tpu.dot_dimension_numbers<[1], [0], [0], [1], [0, 0, 1, 1], [], []>} : vector<256x128xf32>, vector<128x256xf32>, vector<256x256xf32> -> vector<256x256xf32>
    %c0_18 = arith.constant 0 : index
    %c2 = arith.constant 2 : index
    %c0_19 = arith.constant 0 : index
    %13 = tpu.strided_load %arg1[%c0_18, %c2, %c0_19] {strides = array<i32: 1, 2, 1>} : memref<4x257x128xf32, #tpu.memory_space<vmem>>, vector<4x8x128xf32>
    %c0_20 = arith.constant 0 : index
    %c34 = arith.constant 34 : index
    %c0_21 = arith.constant 0 : index
    %14 = tpu.strided_load %arg1[%c0_20, %c34, %c0_21] {strides = array<i32: 1, 2, 1>} : memref<4x257x128xf32, #tpu.memory_space<vmem>>, vector<4x8x128xf32>
    %c0_22 = arith.constant 0 : index
    %c66 = arith.constant 66 : index
    %c0_23 = arith.constant 0 : index
    %15 = tpu.strided_load %arg1[%c0_22, %c66, %c0_23] {strides = array<i32: 1, 2, 1>} : memref<4x257x128xf32, #tpu.memory_space<vmem>>, vector<4x8x128xf32>
    %c0_24 = arith.constant 0 : index
    %c98 = arith.constant 98 : index
    %c0_25 = arith.constant 0 : index
    %16 = tpu.strided_load %arg1[%c0_24, %c98, %c0_25] {strides = array<i32: 1, 2, 1>} : memref<4x257x128xf32, #tpu.memory_space<vmem>>, vector<4x8x128xf32>
    %c0_26 = arith.constant 0 : index
    %c130 = arith.constant 130 : index
    %c0_27 = arith.constant 0 : index
    %17 = tpu.strided_load %arg1[%c0_26, %c130, %c0_27] {strides = array<i32: 1, 2, 1>} : memref<4x257x128xf32, #tpu.memory_space<vmem>>, vector<4x8x128xf32>
    %c0_28 = arith.constant 0 : index
    %c162 = arith.constant 162 : index
    %c0_29 = arith.constant 0 : index
    %18 = tpu.strided_load %arg1[%c0_28, %c162, %c0_29] {strides = array<i32: 1, 2, 1>} : memref<4x257x128xf32, #tpu.memory_space<vmem>>, vector<4x8x128xf32>
    %c0_30 = arith.constant 0 : index
    %c194 = arith.constant 194 : index
    %c0_31 = arith.constant 0 : index
    %19 = tpu.strided_load %arg1[%c0_30, %c194, %c0_31] {strides = array<i32: 1, 2, 1>} : memref<4x257x128xf32, #tpu.memory_space<vmem>>, vector<4x8x128xf32>
    %c0_32 = arith.constant 0 : index
    %c226 = arith.constant 226 : index
    %c0_33 = arith.constant 0 : index
    %20 = tpu.strided_load %arg1[%c0_32, %c226, %c0_33] {strides = array<i32: 1, 2, 1>} : memref<4x257x128xf32, #tpu.memory_space<vmem>>, vector<4x8x128xf32>
    %21 = tpu.concatenate %13, %14, %15, %16, %17, %18, %19, %20 in 1 : vector<4x8x128xf32>, vector<4x8x128xf32>, vector<4x8x128xf32>, vector<4x8x128xf32>, vector<4x8x128xf32>, vector<4x8x128xf32>, vector<4x8x128xf32>, vector<4x8x128xf32> -> vector<4x64x128xf32>
    %22 = vector.shape_cast %21 : vector<4x64x128xf32> to vector<256x128xf32>
    %c1_34 = arith.constant 1 : index
    %c0_35 = arith.constant 0 : index
    %c0_36 = arith.constant 0 : index
    %23 = vector.load %arg2[%c1_34, %c0_35, %c0_36] : memref<4x128x256xf32, #tpu.memory_space<vmem>>, vector<1x128x256xf32>
    %24 = vector.shape_cast %23 : vector<1x128x256xf32> to vector<128x256xf32>
    %cst_37 = arith.constant dense<0.000000e+00> : vector<256x256xf32>
    %25 = tpu.matmul %22, %24, %cst_37 {dimension_numbers = #tpu.dot_dimension_numbers<[1], [0], [0], [1], [0, 0, 1, 1], [], []>} : vector<256x128xf32>, vector<128x256xf32>, vector<256x256xf32> -> vector<256x256xf32>
    %26 = arith.addf %12, %25 : vector<256x256xf32>
    %c0_38 = arith.constant 0 : index
    %c17 = arith.constant 17 : index
    %c0_39 = arith.constant 0 : index
    %27 = tpu.strided_load %arg1[%c0_38, %c17, %c0_39] {strides = array<i32: 1, 2, 1>} : memref<4x257x128xf32, #tpu.memory_space<vmem>>, vector<4x8x128xf32>
    %c0_40 = arith.constant 0 : index
    %c49 = arith.constant 49 : index
    %c0_41 = arith.constant 0 : index
    %28 = tpu.strided_load %arg1[%c0_40, %c49, %c0_41] {strides = array<i32: 1, 2, 1>} : memref<4x257x128xf32, #tpu.memory_space<vmem>>, vector<4x8x128xf32>
    %c0_42 = arith.constant 0 : index
    %c81 = arith.constant 81 : index
    %c0_43 = arith.constant 0 : index
    %29 = tpu.strided_load %arg1[%c0_42, %c81, %c0_43] {strides = array<i32: 1, 2, 1>} : memref<4x257x128xf32, #tpu.memory_space<vmem>>, vector<4x8x128xf32>
    %c0_44 = arith.constant 0 : index
    %c113 = arith.constant 113 : index
    %c0_45 = arith.constant 0 : index
    %30 = tpu.strided_load %arg1[%c0_44, %c113, %c0_45] {strides = array<i32: 1, 2, 1>} : memref<4x257x128xf32, #tpu.memory_space<vmem>>, vector<4x8x128xf32>
    %c0_46 = arith.constant 0 : index
    %c145 = arith.constant 145 : index
    %c0_47 = arith.constant 0 : index
    %31 = tpu.strided_load %arg1[%c0_46, %c145, %c0_47] {strides = array<i32: 1, 2, 1>} : memref<4x257x128xf32, #tpu.memory_space<vmem>>, vector<4x8x128xf32>
    %c0_48 = arith.constant 0 : index
    %c177 = arith.constant 177 : index
    %c0_49 = arith.constant 0 : index
    %32 = tpu.strided_load %arg1[%c0_48, %c177, %c0_49] {strides = array<i32: 1, 2, 1>} : memref<4x257x128xf32, #tpu.memory_space<vmem>>, vector<4x8x128xf32>
    %c0_50 = arith.constant 0 : index
    %c209 = arith.constant 209 : index
    %c0_51 = arith.constant 0 : index
    %33 = tpu.strided_load %arg1[%c0_50, %c209, %c0_51] {strides = array<i32: 1, 2, 1>} : memref<4x257x128xf32, #tpu.memory_space<vmem>>, vector<4x8x128xf32>
    %c0_52 = arith.constant 0 : index
    %c241 = arith.constant 241 : index
    %c0_53 = arith.constant 0 : index
    %34 = tpu.strided_load %arg1[%c0_52, %c241, %c0_53] {strides = array<i32: 1, 2, 1>} : memref<4x257x128xf32, #tpu.memory_space<vmem>>, vector<4x8x128xf32>
    %35 = tpu.concatenate %27, %28, %29, %30, %31, %32, %33, %34 in 1 : vector<4x8x128xf32>, vector<4x8x128xf32>, vector<4x8x128xf32>, vector<4x8x128xf32>, vector<4x8x128xf32>, vector<4x8x128xf32>, vector<4x8x128xf32>, vector<4x8x128xf32> -> vector<4x64x128xf32>
    %36 = vector.shape_cast %35 : vector<4x64x128xf32> to vector<256x128xf32>
    %c2_54 = arith.constant 2 : index
    %c0_55 = arith.constant 0 : index
    %c0_56 = arith.constant 0 : index
    %37 = vector.load %arg2[%c2_54, %c0_55, %c0_56] : memref<4x128x256xf32, #tpu.memory_space<vmem>>, vector<1x128x256xf32>
    %38 = vector.shape_cast %37 : vector<1x128x256xf32> to vector<128x256xf32>
    %cst_57 = arith.constant dense<0.000000e+00> : vector<256x256xf32>
    %39 = tpu.matmul %36, %38, %cst_57 {dimension_numbers = #tpu.dot_dimension_numbers<[1], [0], [0], [1], [0, 0, 1, 1], [], []>} : vector<256x128xf32>, vector<128x256xf32>, vector<256x256xf32> -> vector<256x256xf32>
    %40 = arith.addf %26, %39 : vector<256x256xf32>
    %c0_58 = arith.constant 0 : index
    %c18 = arith.constant 18 : index
    %c0_59 = arith.constant 0 : index
    %41 = tpu.strided_load %arg1[%c0_58, %c18, %c0_59] {strides = array<i32: 1, 2, 1>} : memref<4x257x128xf32, #tpu.memory_space<vmem>>, vector<4x8x128xf32>
    %c0_60 = arith.constant 0 : index
    %c50 = arith.constant 50 : index
    %c0_61 = arith.constant 0 : index
    %42 = tpu.strided_load %arg1[%c0_60, %c50, %c0_61] {strides = array<i32: 1, 2, 1>} : memref<4x257x128xf32, #tpu.memory_space<vmem>>, vector<4x8x128xf32>
    %c0_62 = arith.constant 0 : index
    %c82 = arith.constant 82 : index
    %c0_63 = arith.constant 0 : index
    %43 = tpu.strided_load %arg1[%c0_62, %c82, %c0_63] {strides = array<i32: 1, 2, 1>} : memref<4x257x128xf32, #tpu.memory_space<vmem>>, vector<4x8x128xf32>
    %c0_64 = arith.constant 0 : index
    %c114 = arith.constant 114 : index
    %c0_65 = arith.constant 0 : index
    %44 = tpu.strided_load %arg1[%c0_64, %c114, %c0_65] {strides = array<i32: 1, 2, 1>} : memref<4x257x128xf32, #tpu.memory_space<vmem>>, vector<4x8x128xf32>
    %c0_66 = arith.constant 0 : index
    %c146 = arith.constant 146 : index
    %c0_67 = arith.constant 0 : index
    %45 = tpu.strided_load %arg1[%c0_66, %c146, %c0_67] {strides = array<i32: 1, 2, 1>} : memref<4x257x128xf32, #tpu.memory_space<vmem>>, vector<4x8x128xf32>
    %c0_68 = arith.constant 0 : index
    %c178 = arith.constant 178 : index
    %c0_69 = arith.constant 0 : index
    %46 = tpu.strided_load %arg1[%c0_68, %c178, %c0_69] {strides = array<i32: 1, 2, 1>} : memref<4x257x128xf32, #tpu.memory_space<vmem>>, vector<4x8x128xf32>
    %c0_70 = arith.constant 0 : index
    %c210 = arith.constant 210 : index
    %c0_71 = arith.constant 0 : index
    %47 = tpu.strided_load %arg1[%c0_70, %c210, %c0_71] {strides = array<i32: 1, 2, 1>} : memref<4x257x128xf32, #tpu.memory_space<vmem>>, vector<4x8x128xf32>
    %c0_72 = arith.constant 0 : index
    %c242 = arith.constant 242 : index
    %c0_73 = arith.constant 0 : index
    %48 = tpu.strided_load %arg1[%c0_72, %c242, %c0_73] {strides = array<i32: 1, 2, 1>} : memref<4x257x128xf32, #tpu.memory_space<vmem>>, vector<4x8x128xf32>
    %49 = tpu.concatenate %41, %42, %43, %44, %45, %46, %47, %48 in 1 : vector<4x8x128xf32>, vector<4x8x128xf32>, vector<4x8x128xf32>, vector<4x8x128xf32>, vector<4x8x128xf32>, vector<4x8x128xf32>, vector<4x8x128xf32>, vector<4x8x128xf32> -> vector<4x64x128xf32>
    %50 = vector.shape_cast %49 : vector<4x64x128xf32> to vector<256x128xf32>
    %c3 = arith.constant 3 : index
    %c0_74 = arith.constant 0 : index
    %c0_75 = arith.constant 0 : index
    %51 = vector.load %arg2[%c3, %c0_74, %c0_75] : memref<4x128x256xf32, #tpu.memory_space<vmem>>, vector<1x128x256xf32>
    %52 = vector.shape_cast %51 : vector<1x128x256xf32> to vector<128x256xf32>
    %cst_76 = arith.constant dense<0.000000e+00> : vector<256x256xf32>
    %53 = tpu.matmul %50, %52, %cst_76 {dimension_numbers = #tpu.dot_dimension_numbers<[1], [0], [0], [1], [0, 0, 1, 1], [], []>} : vector<256x128xf32>, vector<128x256xf32>, vector<256x256xf32> -> vector<256x256xf32>
    %54 = arith.addf %40, %53 : vector<256x256xf32>
    %c0_77 = arith.constant 0 : index
    %c0_78 = arith.constant 0 : index
    %55 = vector.load %arg3[%c0_77, %c0_78] : memref<1x256xf32, #tpu.memory_space<vmem>>, vector<1x256xf32>
    %56 = vector.broadcast %55 : vector<1x256xf32> to vector<256x256xf32>
    %57 = arith.addf %54, %56 : vector<256x256xf32>
    %cst_79 = arith.constant 5.000000e-01 : f32
    %58 = vector.broadcast %cst_79 : f32 to vector<256x256xf32>
    %59 = arith.mulf %58, %57 : vector<256x256xf32>
    %cst_80 = arith.constant 0.707106769 : f32
    %60 = vector.broadcast %cst_80 : f32 to vector<256x256xf32>
    %61 = arith.mulf %57, %60 : vector<256x256xf32>
    %62 = math.erf %61 : vector<256x256xf32>
    %cst_81 = arith.constant 1.000000e+00 : f32
    %63 = vector.broadcast %cst_81 : f32 to vector<256x256xf32>
    %64 = arith.addf %63, %62 : vector<256x256xf32>
    %65 = arith.mulf %59, %64 : vector<256x256xf32>
    %66 = vector.shape_cast %65 : vector<256x256xf32> to vector<4x64x256xf32>
    %c0_82 = arith.constant 0 : index
    %c0_83 = arith.constant 0 : index
    %c0_84 = arith.constant 0 : index
    %67 = vector.load %arg5[%c0_82, %c0_83, %c0_84] : memref<4x64x256xf32, #tpu.memory_space<vmem>>, vector<4x64x256xf32>
    tpu.vector_store %arg5[%c0_82, %c0_83, %c0_84], %66 {strides = array<i32>} : memref<4x64x256xf32, #tpu.memory_space<vmem>>, vector<4x64x256xf32>,
    %c0_85 = arith.constant 0 : index
    %c0_86 = arith.constant 0 : index
    %c0_87 = arith.constant 0 : index
    %68 = vector.load %arg1[%c0_85, %c0_86, %c0_87] : memref<4x257x128xf32, #tpu.memory_space<vmem>>, vector<4x1x128xf32>
    %69 = vector.shape_cast %68 : vector<4x1x128xf32> to vector<4x128xf32>
    %c0_88 = arith.constant 0 : index
    %c0_89 = arith.constant 0 : index
    %70 = vector.load %arg4[%c0_88, %c0_89] : memref<128x256xf32, #tpu.memory_space<vmem>>, vector<128x256xf32>
    %cst_90 = arith.constant dense<0.000000e+00> : vector<4x256xf32>
    %71 = tpu.matmul %69, %70, %cst_90 {dimension_numbers = #tpu.dot_dimension_numbers<[1], [0], [0], [1], [0, 0, 1, 1], [], []>} : vector<4x128xf32>, vector<128x256xf32>, vector<4x256xf32> -> vector<4x256xf32>
    %c0_91 = arith.constant 0 : index
    %c0_92 = arith.constant 0 : index
    %c0_93 = arith.constant 0 : index
    %72 = vector.load %arg6[%c0_91, %c0_92, %c0_93] : memref<4x1x256xf32, #tpu.memory_space<vmem>>, vector<4x1x256xf32>
    %73 = vector.shape_cast %72 : vector<4x1x256xf32> to vector<4x256xf32>
    %74 = vector.shape_cast %71 : vector<4x256xf32> to vector<4x1x256xf32>
    tpu.vector_store %arg6[%c0_91, %c0_92, %c0_93], %74 {strides = array<i32>} : memref<4x1x256xf32, #tpu.memory_space<vmem>>, vector<4x1x256xf32>,
    return
  }
  func.func @transform_0(%arg0: i32) -> (i32, i32, i32) {
    %c0_i32 = arith.constant 0 : i32
    %c0_i32_0 = arith.constant 0 : i32
    %c0_i32_1 = arith.constant 0 : i32
    return %arg0, %c0_i32, %c0_i32_0 : i32, i32, i32
  }
  func.func @transform_1(%arg0: i32) -> (i32, i32, i32) {
    %c0_i32 = arith.constant 0 : i32
    %c0_i32_0 = arith.constant 0 : i32
    %c0_i32_1 = arith.constant 0 : i32
    %c0_i32_2 = arith.constant 0 : i32
    return %c0_i32, %c0_i32_0, %c0_i32_1 : i32, i32, i32
  }
  func.func @transform_2(%arg0: i32) -> (i32, i32) {
    %c0_i32 = arith.constant 0 : i32
    %c0_i32_0 = arith.constant 0 : i32
    %c0_i32_1 = arith.constant 0 : i32
    return %c0_i32, %c0_i32_0 : i32, i32
  }
  func.func @transform_3(%arg0: i32) -> (i32, i32) {
    %c0_i32 = arith.constant 0 : i32
    %c0_i32_0 = arith.constant 0 : i32
    %c0_i32_1 = arith.constant 0 : i32
    return %c0_i32, %c0_i32_0 : i32, i32
  }
  func.func @transform_4(%arg0: i32) -> (i32, i32, i32) {
    %c0_i32 = arith.constant 0 : i32
    %c0_i32_0 = arith.constant 0 : i32
    %c0_i32_1 = arith.constant 0 : i32
    return %arg0, %c0_i32, %c0_i32_0 : i32, i32, i32
  }
  func.func @transform_5(%arg0: i32) -> (i32, i32, i32) {
    %c0_i32 = arith.constant 0 : i32
    %c0_i32_0 = arith.constant 0 : i32
    %c0_i32_1 = arith.constant 0 : i32
    return %arg0, %c0_i32, %c0_i32_0 : i32, i32, i32
  }
}

</mosaic_0001>

<bundles_post_ra>
// kernel: tpu_custom_call.1
= control target key start
LH: loop header
LB: loop body
LE: loop exit
PB: predicated region body
PF: predicated region fallthrough
CT: control target
= control target key end

     0   :  { %11 = vsyncpa [#allocation3], 0  ;;  %s4733_s0 = inlined_call_operand.vmem [shape: f32[8,257,128], index: 0, kind: input, shape index: {}]   ;;  %s4734_s1 = inlined_call_operand.vmem [shape: f32[4,128,256], index: 1, kind: input, shape index: {}]   ;;  %s4735_s2 = inlined_call_operand.vmem [shape: f32[1,256], index: 2, kind: input, shape index: {}]   ;;  %s4736_s3 = inlined_call_operand.vmem [shape: f32[128,256], index: 3, kind: input, shape index: {}]   ;;  %s4737_s4 = inlined_call_operand.hbm [shape: f32[8,64,256], index: 4, kind: output, shape index: {0}]   ;;  %s4738_s5 = inlined_call_operand.hbm [shape: f32[8,1,256], index: 5, kind: output, shape index: {1}]  }
   0x1   :  { %13 = vsyncpa [#allocation3 + $0x1], 0 }
   0x2   :  { %14 = vsyncpa [#allocation5], 0 }
   0x3   :  { %16 = vsyncpa [#allocation5 + $0x1], 0  ;;  %s3446_s18 = smov 0   ;;  %s3448_s19 = smov 0  }
   0x4   :  { %s3450_s20 = smov 0   ;;  %s3452_s21 = smov 0  }
   0x5 LB: > { %s3467_s22 = sadd.s32 4294967295, %s3406_s21   ;;  %s2535_s23 = sadd.s32 4294967294, %s3406_s21   ;;  %s3406_s21 = sphi %s3452_s21, %s4747_s21   ;;  %s3402_s20 = sphi %s3450_s20, %s4746_s20   ;;  %s3398_s19 = sphi %s3448_s19, %s4745_s19   ;;  %s3394_s18 = sphi %s3446_s18, %s4744_s18  }
   0x6   : > { %s3471_s24 = sadd.s32 1, %s3406_s21   ;;  %s118_s25 = sadd.s32 1, %s3402_s20 }
   0x7   : > { %s115_s26 = ssub.s32 %s3406_s21, %s3471_s24  ;;  %p128_p0 = scmp.ne.s32.totalorder %s3402_s20, %s3398_s19 }
   0x8   : > { %p116_p1 = scmp.eq.s32.totalorder %s115_s26, 0  ;;  %p129_p2 = scmp.eq.s32.totalorder %s3467_s22, 1 }
   0x9   : > { %p134_p3 = scmp.ne.s32.totalorder %s3398_s19, %s3394_s18  ;;  %p135_p4 = scmp.eq.s32.totalorder %s2535_s23, 1 }
   0xa   : > { %s3482_s27 = scalar_select %p116_p1, %s3402_s20, %s118_s25  }
   0xb   : > { %p3484_p5 = por %p129_p2, %p128_p0  ;;  %p3488_p6 = por %p135_p4, %p134_p3 }
   0xc   : > { %p2538_p7 = scmp.ge.s32.totalorder %s3406_s21, 1  ;;  %p198_p8 = scmp.lt.s32.totalorder %s3406_s21, 3 }
   0xe   : > { %p199_p9 = pnand %p2538_p7, %p198_p8 }
   0xf   : > { %v2608_v0 = vld [vmem:[%s4734_s1 + $0x108] sm:$0xff] (!%p199_p9)  ;;  %v2610_v1 = vld [vmem:[%s4734_s1 + $0x118] sm:$0xff] (!%p199_p9)  ;;  %v2607_v5 = vld [vmem:[%s4734_s1 + $0x100] sm:$0xff] (!%p199_p9)  ;;  %v3408_v7 = vmov (!%p199_p9), 0.0   ;;  %s2541_s9 = sshll.u32 (!%p199_p9), %s3467_s22, 2  ;;  %vm2285_vm0 = vcmask (!%p199_p9), 1041409  }
  0x10   : > { %202 = sbr.rel (%p199_p9) target bundleno = 570 (0x23a), region = 36  ;;  %v2672_v2 = vld [vmem:[%s4734_s1 + $0x208] sm:$0xff] (!%p199_p9)  ;;  %v2781_v3 = vpack.c.bf16 (!%p199_p9), %v2610_v1, %v2608_v0  ;;  %v2674_v4 = vld [vmem:[%s4734_s1 + $0x218] sm:$0xff] (!%p199_p9)  ;;  %v2609_v6 = vld [vmem:[%s4734_s1 + $0x110] sm:$0xff] (!%p199_p9)  ;;  %498 = vmatprep.mubr.f32.mxu1 (!%p199_p9), %v3408_v7  ;;  %1109 = vmatprep.mubr.f32.mxu0 (!%p199_p9), %v3408_v7  ;;  %p3638_p10 = scmp.lt.s32.totalorder (!%p199_p9), %s2541_s9, 7  ;;  %vm2288_vm1 = vcmask (!%p199_p9), 1042434  }
  0x11   : > { %v2845_v8 = vpack.c.bf16 (!%p199_p9), %v2674_v4, %v2672_v2  ;;  %v2783_v9 = vpack.c.bf16 (!%p199_p9), %v2609_v6, %v2607_v5  ;;  %v2671_v10 = vld [vmem:[%s4734_s1 + $0x200] sm:$0xff] (!%p199_p9)  ;;  %v2673_v11 = vld [vmem:[%s4734_s1 + $0x210] sm:$0xff] (!%p199_p9)  ;;  %v2612_v12 = vld [vmem:[%s4734_s1 + $0x128] sm:$0xff] (!%p199_p9)  ;;  %vm2291_vm2 = vcmask (!%p199_p9), 1043459   ;;  %s2780_s26 = sshll.u32 (!%p199_p9), %s3467_s22, 7  ;;  %s3410_s10 = smov (!%p199_p9), [#allocation4]  }
  0x12   : > { %2782 = vmatprep.subr.bf16.mxu1 (!%p199_p9), %v2781_v3  ;;  %v2847_v13 = vpack.c.bf16 (!%p199_p9), %v2673_v11, %v2671_v10  ;;  %v2614_v14 = vld [vmem:[%s4734_s1 + $0x138] sm:$0xff] (!%p199_p9)  ;;  %v2676_v15 = vld [vmem:[%s4734_s1 + $0x228] sm:$0xff] (!%p199_p9)  ;;  %v2611_v19 = vld [vmem:[%s4734_s1 + $0x120] sm:$0xff] (!%p199_p9)  ;;  %s4639_s25 = scalar_lea.hbm (!%p199_p9), %s4738_s5, %s2780_s26  ;;  %s3316_s11 = sshll.u32 (!%p199_p9), %s3410_s10, 4  ;;  %s3317_s11 = int_to_ptr.vmem [resolvable:$false] %s3316_s11 }
  0x13   : > { %v2678_v16 = vld [vmem:[%s4734_s1 + $0x238] sm:$0xff] (!%p199_p9)  ;;  %2846 = vmatprep.subr.bf16.mxu0 (!%p199_p9), %v2845_v8  ;;  %2784 = vmatpush1.bf16.msra.mxu1 (!%p199_p9), %v2783_v9  ;;  %v2785_v17 = vpack.c.bf16 (!%p199_p9), %v2614_v14, %v2612_v12  ;;  %v2613_v20 = vld [vmem:[%s4734_s1 + $0x130] sm:$0xff] (!%p199_p9)  ;;  %v2675_v21 = vld [vmem:[%s4734_s1 + $0x220] sm:$0xff] (!%p199_p9)  ;;  %s3318_s12 = scalar_lea.vmem (!%p199_p9), %s3317_s11, 256 }
  0x14   : > { %v2849_v18 = vpack.c.bf16 (!%p199_p9), %v2678_v16, %v2676_v15  ;;  %2848 = vmatpush1.bf16.msra.mxu0 (!%p199_p9), %v2847_v13  ;;  %v2787_v22 = vpack.c.bf16 (!%p199_p9), %v2613_v20, %v2611_v19  ;;  %v2677_v23 = vld [vmem:[%s4734_s1 + $0x230] sm:$0xff] (!%p199_p9)  ;;  %v2616_v24 = vld [vmem:[%s4734_s1 + $0x148] sm:$0xff] (!%p199_p9)  ;;  %v2618_v25 = vld [vmem:[%s4734_s1 + $0x158] sm:$0xff] (!%p199_p9) }
  0x15   : > { %2786 = vmatprep.subr.bf16.mxu1 (!%p199_p9), %v2785_v17  ;;  %v2851_v26 = vpack.c.bf16 (!%p199_p9), %v2677_v23, %v2675_v21  ;;  %v2789_v27 = vpack.c.bf16 (!%p199_p9), %v2618_v25, %v2616_v24  ;;  %v2680_v28 = vld [vmem:[%s4734_s1 + $0x248] sm:$0xff] (!%p199_p9)  ;;  %v2682_v29 = vld [vmem:[%s4734_s1 + $0x258] sm:$0xff] (!%p199_p9)  ;;  %v2615_v30 = vld [vmem:[%s4734_s1 + $0x140] sm:$0xff] (!%p199_p9) }
  0x16   : > { %2850 = vmatprep.subr.bf16.mxu0 (!%p199_p9), %v2849_v18  ;;  %v2853_v31 = vpack.c.bf16 (!%p199_p9), %v2682_v29, %v2680_v28  ;;  %v2617_v32 = vld [vmem:[%s4734_s1 + $0x150] sm:$0xff] (!%p199_p9)  ;;  %v2679_v33 = vld [vmem:[%s4734_s1 + $0x240] sm:$0xff] (!%p199_p9)  ;;  %v2620_v36 = vld [vmem:[%s4734_s1 + $0x168] sm:$0xff] (!%p199_p9) }
  0x17   : > { %v2681_v34 = vld [vmem:[%s4734_s1 + $0x250] sm:$0xff]  ;;  %2788 = vmatpush1.bf16.msra.mxu1 %v2787_v22  ;;  %v2791_v35 = vpack.c.bf16 %v2617_v32, %v2615_v30  ;;  %v2622_v37 = vld [vmem:[%s4734_s1 + $0x178] sm:$0xff]  ;;  %v2684_v38 = vld [vmem:[%s4734_s1 + $0x268] sm:$0xff]  ;;  %s4749_s9 = smov (!%p3638_p10, %s2541_s9), 7 }
  0x18   : > { %2852 = vmatpush1.bf16.msra.mxu0 %v2851_v26  ;;  %2790 = vmatprep.subr.bf16.mxu1 %v2789_v27  ;;  %v2855_v39 = vpack.c.bf16 %v2681_v34, %v2679_v33  ;;  %v2793_v40 = vpack.c.bf16 %v2622_v37, %v2620_v36  ;;  %v2686_v41 = vld [vmem:[%s4734_s1 + $0x278] sm:$0xff]  ;;  %v2619_v42 = vld [vmem:[%s4734_s1 + $0x160] sm:$0xff]  ;;  %v2621_v43 = vld [vmem:[%s4734_s1 + $0x170] sm:$0xff]  ;;  %s3133_s8 = smul.u32 264, %s4749_s9 }
  0x19   : > { %2854 = vmatprep.subr.bf16.mxu0 %v2853_v31  ;;  %v2857_v44 = vpack.c.bf16 %v2686_v41, %v2684_v38  ;;  %v2683_v45 = vld [vmem:[%s4734_s1 + $0x260] sm:$0xff]  ;;  %v2685_v46 = vld [vmem:[%s4734_s1 + $0x270] sm:$0xff]  ;;  %v2624_v47 = vld [vmem:[%s4734_s1 + $0x188] sm:$0xff]  ;;  %v2795_v51 = vpack.c.bf16 %v2621_v43, %v2619_v42 }
  0x1a   : > { %v2626_v48 = vld [vmem:[%s4734_s1 + $0x198] sm:$0xff]  ;;  %v2688_v49 = vld [vmem:[%s4734_s1 + $0x288] sm:$0xff]  ;;  %v2859_v52 = vpack.c.bf16 %v2685_v46, %v2683_v45  ;;  %v2623_v54 = vld [vmem:[%s4734_s1 + $0x180] sm:$0xff]  ;;  %s3713_s30 = scalar_lea.vmem %s4733_s0, %s3133_s8 }
  0x1b   : > { %v2690_v50 = vld [vmem:[%s4734_s1 + $0x298] sm:$0xff]  ;;  %2792 = vmatpush1.bf16.msra.mxu1 %v2791_v35  ;;  %v2797_v53 = vpack.c.bf16 %v2626_v48, %v2624_v47  ;;  %v2625_v55 = vld [vmem:[%s4734_s1 + $0x190] sm:$0xff]  ;;  %v2687_v56 = vld [vmem:[%s4734_s1 + $0x280] sm:$0xff] }
  0x1c   : > { %2856 = vmatpush1.bf16.msra.mxu0 %v2855_v39  ;;  %2794 = vmatprep.subr.bf16.mxu1 %v2793_v40  ;;  %v2861_v57 = vpack.c.bf16 %v2690_v50, %v2688_v49  ;;  %v2689_v58 = vld [vmem:[%s4734_s1 + $0x290] sm:$0xff]  ;;  %v2628_v59 = vld [vmem:[%s4734_s1 + $0x1a8] sm:$0xff]  ;;  %v2630_v60 = vld [vmem:[%s4734_s1 + $0x1b8] sm:$0xff]  ;;  %v2799_v63 = vpack.c.bf16 %v2625_v55, %v2623_v54 }
  0x1d   : > { %2858 = vmatprep.subr.bf16.mxu0 %v2857_v44  ;;  %v2692_v61 = vld [vmem:[%s4734_s1 + $0x2a8] sm:$0xff]  ;;  %v2694_v62 = vld [vmem:[%s4734_s1 + $0x2b8] sm:$0xff]  ;;  %v2863_v0 = vpack.c.bf16 %v2689_v58, %v2687_v56  ;;  %v2801_v1 = vpack.c.bf16 %v2630_v60, %v2628_v59  ;;  %v2627_v2 = vld [vmem:[%s4734_s1 + $0x1a0] sm:$0xff] }
  0x1e   : > { %v2629_v3 = vld [vmem:[%s4734_s1 + $0x1b0] sm:$0xff]  ;;  %v2691_v4 = vld [vmem:[%s4734_s1 + $0x2a0] sm:$0xff]  ;;  %v2865_v5 = vpack.c.bf16 %v2694_v62, %v2692_v61  ;;  %v2632_v8 = vld [vmem:[%s4734_s1 + $0x1c8] sm:$0xff] }
  0x1f   : > { %2796 = vmatpush1.bf16.msra.mxu1 %v2795_v51  ;;  %v2693_v6 = vld [vmem:[%s4734_s1 + $0x2b0] sm:$0xff]  ;;  %v2634_v9 = vld [vmem:[%s4734_s1 + $0x1d8] sm:$0xff]  ;;  %v2696_v10 = vld [vmem:[%s4734_s1 + $0x2c8] sm:$0xff]  ;;  %v2803_v12 = vpack.c.bf16 %v2629_v3, %v2627_v2 }
  0x20   : > { %2860 = vmatpush1.bf16.msra.mxu0 %v2859_v52  ;;  %2798 = vmatprep.subr.bf16.mxu1 %v2797_v53  ;;  %v2698_v11 = vld [vmem:[%s4734_s1 + $0x2d8] sm:$0xff]  ;;  %v2867_v13 = vpack.c.bf16 %v2693_v6, %v2691_v4  ;;  %v2805_v14 = vpack.c.bf16 %v2634_v9, %v2632_v8  ;;  %v2631_v15 = vld [vmem:[%s4734_s1 + $0x1c0] sm:$0xff]  ;;  %v2633_v16 = vld [vmem:[%s4734_s1 + $0x1d0] sm:$0xff] }
  0x21   : > { %2862 = vmatprep.subr.bf16.mxu0 %v2861_v57  ;;  %v2695_v17 = vld [vmem:[%s4734_s1 + $0x2c0] sm:$0xff]  ;;  %v2869_v18 = vpack.c.bf16 %v2698_v11, %v2696_v10  ;;  %v2697_v19 = vld [vmem:[%s4734_s1 + $0x2d0] sm:$0xff]  ;;  %v2636_v20 = vld [vmem:[%s4734_s1 + $0x1e8] sm:$0xff]  ;;  %v2807_v24 = vpack.c.bf16 %v2633_v16, %v2631_v15 }
  0x22   : > { %v2638_v21 = vld [vmem:[%s4734_s1 + $0x1f8] sm:$0xff]  ;;  %v2700_v22 = vld [vmem:[%s4734_s1 + $0x2e8] sm:$0xff]  ;;  %v2871_v25 = vpack.c.bf16 %v2697_v19, %v2695_v17  ;;  %v2635_v27 = vld [vmem:[%s4734_s1 + $0x1e0] sm:$0xff] }
  0x23   : > { %2800 = vmatpush1.bf16.msra.mxu1 %v2799_v63  ;;  %v2702_v23 = vld [vmem:[%s4734_s1 + $0x2f8] sm:$0xff]  ;;  %v2809_v26 = vpack.c.bf16 %v2638_v21, %v2636_v20  ;;  %v2637_v28 = vld [vmem:[%s4734_s1 + $0x1f0] sm:$0xff]  ;;  %v2699_v29 = vld [vmem:[%s4734_s1 + $0x2e0] sm:$0xff] }
  0x24   : > { %2864 = vmatpush1.bf16.msra.mxu0 %v2863_v0  ;;  %2802 = vmatprep.subr.bf16.mxu1 %v2801_v1  ;;  %v2873_v30 = vpack.c.bf16 %v2702_v23, %v2700_v22  ;;  %v2701_v31 = vld [vmem:[%s4734_s1 + $0x2f0] sm:$0xff]  ;;  %v306_v32 = vld [vmem:[%s4734_s1 + $0x8] sm:$0xff]  ;;  %v308_v33 = vld [vmem:[%s4734_s1 + $0x18] sm:$0xff]  ;;  %v2811_v36 = vpack.c.bf16 %v2637_v28, %v2635_v27 }
  0x25   : > { %2866 = vmatprep.subr.bf16.mxu0 %v2865_v5  ;;  %v2736_v34 = vld [vmem:[%s4734_s1 + $0x308] sm:$0xff]  ;;  %v2738_v35 = vld [vmem:[%s4734_s1 + $0x318] sm:$0xff]  ;;  %v2875_v37 = vpack.c.bf16 %v2701_v31, %v2699_v29  ;;  %v2813_v38 = vpack.c.bf16 %v308_v33, %v306_v32  ;;  %v305_v39 = vld [vmem:[%s4734_s1] sm:$0xff] }
  0x26   : > { %v307_v40 = vld [vmem:[%s4734_s1 + $0x10] sm:$0xff]  ;;  %v2877_v41 = vpack.c.bf16 %v2738_v35, %v2736_v34  ;;  %v2735_v42 = vld [vmem:[%s4734_s1 + $0x300] sm:$0xff]  ;;  %v310_v44 = vld [vmem:[%s4734_s1 + $0x28] sm:$0xff] }
  0x27   : > { %2804 = vmatpush1.bf16.msra.mxu1 %v2803_v12  ;;  %v2737_v43 = vld [vmem:[%s4734_s1 + $0x310] sm:$0xff]  ;;  %v312_v45 = vld [vmem:[%s4734_s1 + $0x38] sm:$0xff]  ;;  %v2815_v47 = vpack.c.bf16 %v307_v40, %v305_v39  ;;  %v2740_v48 = vld [vmem:[%s4734_s1 + $0x328] sm:$0xff] }
  0x28   : > { %2868 = vmatpush1.bf16.msra.mxu0 %v2867_v13  ;;  %2806 = vmatprep.subr.bf16.mxu1 %v2805_v14  ;;  %v2575_v46 = vld [vmem:[%s3713_s30 + $0x2] ss:$2 sm:$0xff]  ;;  %v2742_v49 = vld [vmem:[%s4734_s1 + $0x338] sm:$0xff]  ;;  %v2879_v51 = vpack.c.bf16 %v2737_v43, %v2735_v42  ;;  %v2817_v52 = vpack.c.bf16 %v312_v45, %v310_v44 }
  0x29   : > { %2870 = vmatprep.subr.bf16.mxu0 %v2869_v18  ;;  %v2639_v50 = vld [vmem:[%s3713_s30 + $0x11] ss:$2 sm:$0xff]  ;;  %v309_v53 = vld [vmem:[%s4734_s1 + $0x20] sm:$0xff]  ;;  %v2881_v56 = vpack.c.bf16 %v2742_v49, %v2740_v48  ;;  %v314_v58 = vld [vmem:[%s4734_s1 + $0x48] sm:$0xff] }
  0x2a   : > { %v311_v54 = vld [vmem:[%s4734_s1 + $0x30] sm:$0xff]  ;;  %v2739_v55 = vld [vmem:[%s4734_s1 + $0x320] sm:$0xff]  ;;  %v316_v59 = vld [vmem:[%s4734_s1 + $0x58] sm:$0xff] }
  0x2b   : > { %2808 = vmatpush1.bf16.msra.mxu1 %v2807_v24  ;;  %v2741_v57 = vld [vmem:[%s4734_s1 + $0x330] sm:$0xff]  ;;  %v2744_v61 = vld [vmem:[%s4734_s1 + $0x348] sm:$0xff]  ;;  %v2746_v62 = vld [vmem:[%s4734_s1 + $0x358] sm:$0xff]  ;;  %v2819_v0 = vpack.c.bf16 %v311_v54, %v309_v53  ;;  %v2821_v2 = vpack.c.bf16 %v316_v59, %v314_v58 }
  0x2c   : > { %2872 = vmatpush1.bf16.msra.mxu0 %v2871_v25  ;;  %2810 = vmatprep.subr.bf16.mxu1 %v2809_v26  ;;  %v2579_v60 = vld [vmem:[%s3713_s30 + $0x22] ss:$2 sm:$0xff]  ;;  %v2643_v63 = vld [vmem:[%s3713_s30 + $0x31] ss:$2 sm:$0xff]  ;;  %v2883_v1 = vpack.c.bf16 %v2741_v57, %v2739_v55  ;;  %v2885_v6 = vpack.c.bf16 %v2746_v62, %v2744_v61 }
  0x2d   : > { %2874 = vmatprep.subr.bf16.mxu0 %v2873_v30  ;;  %v313_v3 = vld [vmem:[%s4734_s1 + $0x40] sm:$0xff]  ;;  %v315_v4 = vld [vmem:[%s4734_s1 + $0x50] sm:$0xff]  ;;  %v318_v9 = vld [vmem:[%s4734_s1 + $0x68] sm:$0xff] }
  0x2e   : > { %v2743_v5 = vld [vmem:[%s4734_s1 + $0x340] sm:$0xff]  ;;  %v2745_v8 = vld [vmem:[%s4734_s1 + $0x350] sm:$0xff]  ;;  %v320_v10 = vld [vmem:[%s4734_s1 + $0x78] sm:$0xff]  ;;  %v2823_v15 = vpack.c.bf16 %v315_v4, %v313_v3 }
  0x2f   : > { %2812 = vmatpush1.bf16.msra.mxu1 %v2811_v36  ;;  %v2583_v11 = vld [vmem:[%s3713_s30 + $0x42] ss:$2 sm:$0xff]  ;;  %v2750_v13 = vld [vmem:[%s4734_s1 + $0x378] sm:$0xff]  ;;  %v2887_v16 = vpack.c.bf16 %v2745_v8, %v2743_v5  ;;  %v2825_v17 = vpack.c.bf16 %v320_v10, %v318_v9 }
  0x30   : > { %2876 = vmatpush1.bf16.msra.mxu0 %v2875_v37  ;;  %2814 = vmatprep.subr.bf16.mxu1 %v2813_v38  ;;  %v2748_v12 = vld [vmem:[%s4734_s1 + $0x368] sm:$0xff]  ;;  %v2647_v14 = vld [vmem:[%s3713_s30 + $0x51] ss:$2 sm:$0xff]  ;;  %v317_v18 = vld [vmem:[%s4734_s1 + $0x60] sm:$0xff] }
  0x31   : > { %2878 = vmatprep.subr.bf16.mxu0 %v2877_v41  ;;  %v319_v19 = vld [vmem:[%s4734_s1 + $0x70] sm:$0xff]  ;;  %v2747_v20 = vld [vmem:[%s4734_s1 + $0x360] sm:$0xff]  ;;  %v2889_v21 = vpack.c.bf16 %v2750_v13, %v2748_v12  ;;  %v322_v23 = vld [vmem:[%s4734_s1 + $0x88] sm:$0xff] }
  0x32   : > { %499 = vmatmul.mubr.f32.vlgmr.msra.gmra.mrb[0].mxu1 %v2575_v46  ;;  %v2749_v22 = vld [vmem:[%s4734_s1 + $0x370] sm:$0xff]  ;;  %v324_v24 = vld [vmem:[%s4734_s1 + $0x98] sm:$0xff]  ;;  %v2752_v26 = vld [vmem:[%s4734_s1 + $0x388] sm:$0xff]  ;;  %v2827_v29 = vpack.c.bf16 %v319_v19, %v317_v18 }
  0x33   : > { %1110 = vmatmul.mubr.f32.vlgmr.msra.gmra.mrb[0].mxu0 %v2639_v50  ;;  %2816 = vmatpush1.bf16.msra.mxu1 %v2815_v47  ;;  %v2587_v25 = vld [vmem:[%s3713_s30 + $0x62] ss:$2 sm:$0xff]  ;;  %v2754_v27 = vld [vmem:[%s4734_s1 + $0x398] sm:$0xff]  ;;  %v2891_v30 = vpack.c.bf16 %v2749_v22, %v2747_v20  ;;  %v2829_v31 = vpack.c.bf16 %v324_v24, %v322_v23 }
  0x34   : > { %2880 = vmatpush1.bf16.msra.mxu0 %v2879_v51  ;;  %504 = vmatprep.mubr.f32.mxu1 %v3408_v7  ;;  %v2651_v28 = vld [vmem:[%s3713_s30 + $0x71] ss:$2 sm:$0xff]  ;;  %v321_v32 = vld [vmem:[%s4734_s1 + $0x80] sm:$0xff]  ;;  %v2893_v34 = vpack.c.bf16 %v2754_v27, %v2752_v26  ;;  %v326_v38 = vld [vmem:[%s4734_s1 + $0xa8] sm:$0xff] }
  0x35   : > { %1115 = vmatprep.mubr.f32.mxu0 %v3408_v7  ;;  %2818 = vmatprep.subr.bf16.mxu1 %v2817_v52  ;;  %v323_v33 = vld [vmem:[%s4734_s1 + $0x90] sm:$0xff]  ;;  %v2751_v35 = vld [vmem:[%s4734_s1 + $0x380] sm:$0xff]  ;;  %v328_v39 = vld [vmem:[%s4734_s1 + $0xb8] sm:$0xff] }
  0x36   : > { %505 = vmatmul.mubr.f32.gmra.mrb[2].mxu1 %v2579_v60  ;;  %2882 = vmatprep.subr.bf16.mxu0 %v2881_v56  ;;  %v2753_v36 = vld [vmem:[%s4734_s1 + $0x390] sm:$0xff]  ;;  %v2831_v41 = vpack.c.bf16 %v323_v33, %v321_v32  ;;  %v2756_v42 = vld [vmem:[%s4734_s1 + $0x3a8] sm:$0xff]  ;;  %v2758_v43 = vld [vmem:[%s4734_s1 + $0x3b8] sm:$0xff]  ;;  %v2833_v45 = vpack.c.bf16 %v328_v39, %v326_v38 }
  0x37   : > { %1116 = vmatmul.mubr.f32.gmra.mrb[2].mxu0 %v2643_v63  ;;  %510 = vmatprep.mubr.f32.mxu1 %v3408_v7  ;;  %v2591_v37 = vld [vmem:[%s3713_s30 + $0x82] ss:$2 sm:$0xff]  ;;  %v2655_v40 = vld [vmem:[%s3713_s30 + $0x91] ss:$2 sm:$0xff]  ;;  %v2895_v44 = vpack.c.bf16 %v2753_v36, %v2751_v35  ;;  %v2897_v48 = vpack.c.bf16 %v2758_v43, %v2756_v42  ;;  %v2577_v39 = vld [vmem:[%s3713_s30 + $0x212] ss:$2 sm:$0xff] }
  0x38   : > { %1121 = vmatprep.mubr.f32.mxu0 %v3408_v7  ;;  %2820 = vmatpush1.bf16.msra.mxu1 %v2819_v0  ;;  %v325_v46 = vld [vmem:[%s4734_s1 + $0xa0] sm:$0xff]  ;;  %v327_v47 = vld [vmem:[%s4734_s1 + $0xb0] sm:$0xff]  ;;  %v330_v54 = vld [vmem:[%s4734_s1 + $0xc8] sm:$0xff] }
  0x39   : > { %2884 = vmatpush1.bf16.msra.mxu0 %v2883_v1  ;;  %2822 = vmatprep.subr.bf16.mxu1 %v2821_v2  ;;  %v2755_v49 = vld [vmem:[%s4734_s1 + $0x3a0] sm:$0xff]  ;;  %v2757_v50 = vld [vmem:[%s4734_s1 + $0x3b0] sm:$0xff]  ;;  %v2835_v53 = vpack.c.bf16 %v327_v47, %v325_v46  ;;  %v332_v56 = vld [vmem:[%s4734_s1 + $0xd8] sm:$0xff] }
  0x3a   : > { %511 = vmatmul.mubr.f32.gmra.mrb[4].mxu1 %v2583_v11  ;;  %2886 = vmatprep.subr.bf16.mxu0 %v2885_v6  ;;  %v2595_v51 = vld [vmem:[%s3713_s30 + $0xa2] ss:$2 sm:$0xff]  ;;  %v2659_v52 = vld [vmem:[%s3713_s30 + $0xb1] ss:$2 sm:$0xff]  ;;  %v2899_v55 = vpack.c.bf16 %v2757_v50, %v2755_v49  ;;  %v2837_v58 = vpack.c.bf16 %v332_v56, %v330_v54  ;;  %v2645_v42 = vld [vmem:[%s3713_s30 + $0x241] ss:$2 sm:$0xff] }
  0x3b   : > { %1122 = vmatmul.mubr.f32.gmra.mrb[4].mxu0 %v2647_v14  ;;  %516 = vmatprep.mubr.f32.mxu1 %v3408_v7  ;;  %v2760_v57 = vld [vmem:[%s4734_s1 + $0x3c8] sm:$0xff]  ;;  %v2762_v59 = vld [vmem:[%s4734_s1 + $0x3d8] sm:$0xff]  ;;  %v329_v60 = vld [vmem:[%s4734_s1 + $0xc0] sm:$0xff] }
  0x3c   : > { %1127 = vmatprep.mubr.f32.mxu0 %v3408_v7  ;;  %2824 = vmatpush1.bf16.msra.mxu1 %v2823_v15  ;;  %v331_v61 = vld [vmem:[%s4734_s1 + $0xd0] sm:$0xff]  ;;  %v2901_v63 = vpack.c.bf16 %v2762_v59, %v2760_v57  ;;  %v2759_v0 = vld [vmem:[%s4734_s1 + $0x3c0] sm:$0xff]  ;;  %v334_v8 = vld [vmem:[%s4734_s1 + $0xe8] sm:$0xff] }
  0x3d   : > { %2888 = vmatpush1.bf16.msra.mxu0 %v2887_v16  ;;  %2826 = vmatprep.subr.bf16.mxu1 %v2825_v17  ;;  %v2599_v62 = vld [vmem:[%s3713_s30 + $0xc2] ss:$2 sm:$0xff]  ;;  %v2663_v2 = vld [vmem:[%s3713_s30 + $0xd1] ss:$2 sm:$0xff]  ;;  %v2839_v3 = vpack.c.bf16 %v331_v61, %v329_v60  ;;  %v2585_v43 = vld [vmem:[%s3713_s30 + $0x252] ss:$2 sm:$0xff] }
  0x3e   : > { %517 = vmatmul.mubr.f32.gmra.mrb[6].mxu1 %v2587_v25  ;;  %2890 = vmatprep.subr.bf16.mxu0 %v2889_v21  ;;  %v2761_v1 = vld [vmem:[%s4734_s1 + $0x3d0] sm:$0xff]  ;;  %v336_v9 = vld [vmem:[%s4734_s1 + $0xf8] sm:$0xff]  ;;  %v2764_v11 = vld [vmem:[%s4734_s1 + $0x3e8] sm:$0xff] }
  0x3f   : > { %1128 = vmatmul.mubr.f32.gmra.mrb[6].mxu0 %v2651_v28  ;;  %522 = vmatprep.mubr.f32.mxu1 %v3408_v7  ;;  %v2603_v4 = vld [vmem:[%s3713_s30 + $0xe2] ss:$2 sm:$0xff]  ;;  %v2903_v5 = vpack.c.bf16 %v2761_v1, %v2759_v0  ;;  %v2667_v6 = vld [vmem:[%s3713_s30 + $0xf1] ss:$2 sm:$0xff]  ;;  %v2841_v10 = vpack.c.bf16 %v336_v9, %v334_v8  ;;  %v2653_v46 = vld [vmem:[%s3713_s30 + $0x281] ss:$2 sm:$0xff] }
  0x40   : > { %1133 = vmatprep.mubr.f32.mxu0 %v3408_v7  ;;  %2828 = vmatpush1.bf16.msra.mxu1 %v2827_v29  ;;  %v2766_v12 = vld [vmem:[%s4734_s1 + $0x3f8] sm:$0xff]  ;;  %v333_v13 = vld [vmem:[%s4734_s1 + $0xe0] sm:$0xff]  ;;  %v335_v15 = vld [vmem:[%s4734_s1 + $0xf0] sm:$0xff] }
  0x41   : > { %2892 = vmatpush1.bf16.msra.mxu0 %v2891_v30  ;;  %2830 = vmatprep.subr.bf16.mxu1 %v2829_v31  ;;  %v2905_v14 = vpack.c.bf16 %v2766_v12, %v2764_v11  ;;  %v2763_v16 = vld [vmem:[%s4734_s1 + $0x3e0] sm:$0xff]  ;;  %v2765_v17 = vld [vmem:[%s4734_s1 + $0x3f0] sm:$0xff]  ;;  %v2843_v18 = vpack.c.bf16 %v335_v15, %v333_v13  ;;  %v2249_v22 = vld [vmem:[%s4736_s3 + $0x8] sm:$0xff] }
  0x42   : > { %523 = vmatmul.mubr.f32.gmra.mrb[8].mxu1 %v2591_v37  ;;  %2894 = vmatprep.subr.bf16.mxu0 %v2893_v34  ;;  %v2907_v19 = vpack.c.bf16 %v2765_v17, %v2763_v16  ;;  %v2576_v20 = vld [vmem:[%s3713_s30 + $0x10a] ss:$2 sm:$0xff]  ;;  %v2640_v21 = vld [vmem:[%s3713_s30 + $0x119] ss:$2 sm:$0xff]  ;;  %v2642_v56 = vld [vmem:[%s3713_s30 + $0x329] ss:$2 sm:$0xff] }
  0x43   : > { %1134 = vmatmul.mubr.f32.gmra.mrb[8].mxu0 %v2655_v40  ;;  %528 = vmatprep.mubr.f32.mxu1 %v3408_v7  ;;  %v2251_v23 = vld [vmem:[%s4736_s3 + $0x18] sm:$0xff]  ;;  %v2641_v40 = vld [vmem:[%s3713_s30 + $0x221] ss:$2 sm:$0xff]  ;;  %v2250_v9 = vld [vmem:[%s4736_s3 + $0x10] sm:$0xff] }
  0x44   : > { %1139 = vmatprep.mubr.f32.mxu0 %v3408_v7  ;;  %2832 = vmatpush1.bf16.msra.mxu1 %v2831_v41  ;;  %v2909_v24 = vpack.c.bf16 %v2251_v23, %v2249_v22  ;;  %v2580_v25 = vld [vmem:[%s3713_s30 + $0x12a] ss:$2 sm:$0xff]  ;;  %v2644_v26 = vld [vmem:[%s3713_s30 + $0x139] ss:$2 sm:$0xff]  ;;  %v2582_v57 = vld [vmem:[%s3713_s30 + $0x33a] ss:$2 sm:$0xff] }
  0x45   : > { %2896 = vmatpush1.bf16.msra.mxu0 %v2895_v44  ;;  %2834 = vmatprep.subr.bf16.mxu1 %v2833_v45  ;;  %v2584_v27 = vld [vmem:[%s3713_s30 + $0x14a] ss:$2 sm:$0xff]  ;;  %v2648_v28 = vld [vmem:[%s3713_s30 + $0x159] ss:$2 sm:$0xff]  ;;  %v2586_v59 = vld [vmem:[%s3713_s30 + $0x35a] ss:$2 sm:$0xff] }
  0x46   : > { %529 = vmatmul.mubr.f32.gmra.mrb[10].mxu1 %v2595_v51  ;;  %2898 = vmatprep.subr.bf16.mxu0 %v2897_v48  ;;  %v2588_v29 = vld [vmem:[%s3713_s30 + $0x16a] ss:$2 sm:$0xff]  ;;  %v2652_v30 = vld [vmem:[%s3713_s30 + $0x179] ss:$2 sm:$0xff]  ;;  %v2650_v60 = vld [vmem:[%s3713_s30 + $0x369] ss:$2 sm:$0xff] }
  0x47   : > { %1140 = vmatmul.mubr.f32.gmra.mrb[10].mxu0 %v2659_v52  ;;  %534 = vmatprep.mubr.f32.mxu1 %v3408_v7  ;;  %v2592_v31 = vld [vmem:[%s3713_s30 + $0x18a] ss:$2 sm:$0xff]  ;;  %v2656_v32 = vld [vmem:[%s3713_s30 + $0x199] ss:$2 sm:$0xff]  ;;  %v2590_v61 = vld [vmem:[%s3713_s30 + $0x37a] ss:$2 sm:$0xff] }
  0x48   : > { %1145 = vmatprep.mubr.f32.mxu0 %v3408_v7  ;;  %2836 = vmatpush1.bf16.msra.mxu1 %v2835_v53  ;;  %v2596_v33 = vld [vmem:[%s3713_s30 + $0x1aa] ss:$2 sm:$0xff]  ;;  %v2660_v34 = vld [vmem:[%s3713_s30 + $0x1b9] ss:$2 sm:$0xff]  ;;  %v2658_v0 = vld [vmem:[%s3713_s30 + $0x3a9] ss:$2 sm:$0xff] }
  0x49   : > { %2900 = vmatpush1.bf16.msra.mxu0 %v2899_v55  ;;  %2838 = vmatprep.subr.bf16.mxu1 %v2837_v58  ;;  %v2600_v35 = vld [vmem:[%s3713_s30 + $0x1ca] ss:$2 sm:$0xff]  ;;  %v2664_v36 = vld [vmem:[%s3713_s30 + $0x1d9] ss:$2 sm:$0xff]  ;;  %v2578_v55 = vld [vmem:[%s3713_s30 + $0x31a] ss:$2 sm:$0xff] }
  0x4a   : > { %535 = vmatmul.mubr.f32.gmra.mrb[12].mxu1 %v2599_v62  ;;  %2902 = vmatprep.subr.bf16.mxu0 %v2901_v63  ;;  %v2604_v37 = vld [vmem:[%s3713_s30 + $0x1ea] ss:$2 sm:$0xff]  ;;  %v2668_v38 = vld [vmem:[%s3713_s30 + $0x1f9] ss:$2 sm:$0xff]  ;;  %v2646_v58 = vld [vmem:[%s3713_s30 + $0x349] ss:$2 sm:$0xff] }
  0x4b   : > { %1146 = vmatmul.mubr.f32.gmra.mrb[12].mxu0 %v2663_v2  ;;  %540 = vmatprep.mubr.f32.mxu1 %v3408_v7  ;;  %v2581_v41 = vld [vmem:[%s3713_s30 + $0x232] ss:$2 sm:$0xff]  ;;  %v2649_v44 = vld [vmem:[%s3713_s30 + $0x261] ss:$2 sm:$0xff] }
  0x4c   : > { %1151 = vmatprep.mubr.f32.mxu0 %v3408_v7  ;;  %2840 = vmatpush1.bf16.msra.mxu1 %v2839_v3  ;;  %v2589_v45 = vld [vmem:[%s3713_s30 + $0x272] ss:$2 sm:$0xff]  ;;  %v2657_v48 = vld [vmem:[%s3713_s30 + $0x2a1] ss:$2 sm:$0xff] }
  0x4d   : > { %2904 = vmatpush1.bf16.msra.mxu0 %v2903_v5  ;;  %2842 = vmatprep.subr.bf16.mxu1 %v2841_v10  ;;  %v2593_v47 = vld [vmem:[%s3713_s30 + $0x292] ss:$2 sm:$0xff]  ;;  %v2661_v50 = vld [vmem:[%s3713_s30 + $0x2c1] ss:$2 sm:$0xff] }
  0x4e   : > { %541 = vmatmul.mubr.f32.gmra.mrb[14].mxu1 %v2603_v4  ;;  %2906 = vmatprep.subr.bf16.mxu0 %v2905_v14  ;;  %v2597_v49 = vld [vmem:[%s3713_s30 + $0x2b2] ss:$2 sm:$0xff]  ;;  %v2665_v52 = vld [vmem:[%s3713_s30 + $0x2e1] ss:$2 sm:$0xff] }
  0x4f   : > { %1152 = vmatmul.mubr.f32.gmra.mrb[14].mxu0 %v2667_v6  ;;  %546 = vmatprep.mubr.f32.mxu1 %v3408_v7  ;;  %v2601_v51 = vld [vmem:[%s3713_s30 + $0x2d2] ss:$2 sm:$0xff]  ;;  %v2669_v54 = vld [vmem:[%s3713_s30 + $0x301] ss:$2 sm:$0xff] }
  0x50   : > { %1157 = vmatprep.mubr.f32.mxu0 %v3408_v7  ;;  %2844 = vmatpush1.bf16.msra.mxu1 %v2843_v18  ;;  %v2605_v53 = vld [vmem:[%s3713_s30 + $0x2f2] ss:$2 sm:$0xff]  ;;  %v2654_v62 = vld [vmem:[%s3713_s30 + $0x389] ss:$2 sm:$0xff] }
  0x51   : > { %2908 = vmatpush1.bf16.msra.mxu0 %v2907_v19  ;;  %2910 = vmatprep.subr.bf16.mxu1 %v2909_v24  ;;  %v2594_v63 = vld [vmem:[%s3713_s30 + $0x39a] ss:$2 sm:$0xff]  ;;  %v2662_v2 = vld [vmem:[%s3713_s30 + $0x3c9] ss:$2 sm:$0xff] }
  0x52   : > { %547 = vmatmul.mubr.f32.gmra.mrb[16].mxu1 %v2576_v20  ;;  %v2598_v1 = vld [vmem:[%s3713_s30 + $0x3ba] ss:$2 sm:$0xff]  ;;  %v2666_v4 = vld [vmem:[%s3713_s30 + $0x3e9] ss:$2 sm:$0xff] }
  0x53   : > { %1158 = vmatmul.mubr.f32.gmra.mrb[16].mxu0 %v2640_v21  ;;  %552 = vmatprep.mubr.f32.mxu1 %v3408_v7  ;;  %v2602_v3 = vld [vmem:[%s3713_s30 + $0x3da] ss:$2 sm:$0xff]  ;;  %v2670_v6 = vld [vmem:[%s3713_s30 + $0x409] ss:$2 sm:$0xff] }
  0x54   : > { %1163 = vmatprep.mubr.f32.mxu0 %v3408_v7  ;;  %v2606_v5 = vld [vmem:[%s3713_s30 + $0x3fa] ss:$2 sm:$0xff]  ;;  %v2543_v12 = vld [vmem:[%s3713_s30 + $0x1] ss:$2 sm:$0xff]  ;;  %v2254_v17 = vld [vmem:[%s4736_s3 + $0x30] sm:$0xff] }
  0x55   : > { %v2248_v8 = vld [vmem:[%s4736_s3] sm:$0xff]  ;;  %v2253_v10 = vld [vmem:[%s4736_s3 + $0x28] sm:$0xff]  ;;  %v2255_v11 = vld [vmem:[%s4736_s3 + $0x38] sm:$0xff] }
  0x56   : > { %553 = vmatmul.mubr.f32.gmra.mrb[18].mxu1 %v2580_v25  ;;  %v2703_v13 = vld [vmem:[%s3713_s30 + $0x12] ss:$2 sm:$0xff]  ;;  %v2911_v14 = vpack.c.bf16 %v2250_v9, %v2248_v8  ;;  %v2913_v15 = vpack.c.bf16 %v2255_v11, %v2253_v10  ;;  %v2257_v18 = vld [vmem:[%s4736_s3 + $0x48] sm:$0xff] }
  0x57   : > { %1164 = vmatmul.mubr.f32.gmra.mrb[18].mxu0 %v2644_v26  ;;  %558 = vmatprep.mubr.f32.mxu1 %v3408_v7  ;;  %v2252_v16 = vld [vmem:[%s4736_s3 + $0x20] sm:$0xff]  ;;  %v2259_v19 = vld [vmem:[%s4736_s3 + $0x58] sm:$0xff]  ;;  %v2258_v25 = vld [vmem:[%s4736_s3 + $0x50] sm:$0xff] }
  0x58   : > { %1169 = vmatprep.mubr.f32.mxu0 %v3408_v7  ;;  %v2547_v20 = vld [vmem:[%s3713_s30 + $0x21] ss:$2 sm:$0xff]  ;;  %v2707_v21 = vld [vmem:[%s3713_s30 + $0x32] ss:$2 sm:$0xff]  ;;  %v2915_v22 = vpack.c.bf16 %v2254_v17, %v2252_v16  ;;  %v2917_v23 = vpack.c.bf16 %v2259_v19, %v2257_v18 }
  0x59   : > { %v2256_v24 = vld [vmem:[%s4736_s3 + $0x40] sm:$0xff]  ;;  %v2261_v26 = vld [vmem:[%s4736_s3 + $0x68] sm:$0xff] }
  0x5a   : > { %559 = vmatmul.mubr.f32.gmra.mrb[20].mxu1 %v2584_v27  ;;  %v2263_v27 = vld [vmem:[%s4736_s3 + $0x78] sm:$0xff]  ;;  %v2548_v8 = vld [vmem:[%s3713_s30 + $0x129] ss:$2 sm:$0xff] }
  0x5b   : > { %1170 = vmatmul.mubr.f32.gmra.mrb[20].mxu0 %v2648_v28  ;;  %564 = vmatprep.mubr.f32.mxu1 %v3408_v7  ;;  %v2551_v28 = vld [vmem:[%s3713_s30 + $0x41] ss:$2 sm:$0xff]  ;;  %v2708_v9 = vld [vmem:[%s3713_s30 + $0x13a] ss:$2 sm:$0xff] }
  0x5c   : > { %1175 = vmatprep.mubr.f32.mxu0 %v3408_v7  ;;  %v2552_v10 = vld [vmem:[%s3713_s30 + $0x149] ss:$2 sm:$0xff]  ;;  %v2712_v11 = vld [vmem:[%s3713_s30 + $0x15a] ss:$2 sm:$0xff] }
  0x5d   : > { %v2564_v16 = vld [vmem:[%s3713_s30 + $0x1a9] ss:$2 sm:$0xff]  ;;  %v2724_v17 = vld [vmem:[%s3713_s30 + $0x1ba] ss:$2 sm:$0xff] }
  0x5e   : > { %565 = vmatmul.mubr.f32.gmra.mrb[22].mxu1 %v2588_v29  ;;  %v2711_v29 = vld [vmem:[%s3713_s30 + $0x52] ss:$2 sm:$0xff]  ;;  %v2568_v18 = vld [vmem:[%s3713_s30 + $0x1c9] ss:$2 sm:$0xff] }
  0x5f   : > { %1176 = vmatmul.mubr.f32.gmra.mrb[22].mxu0 %v2652_v30  ;;  %570 = vmatprep.mubr.f32.mxu1 %v3408_v7  ;;  %v2919_v30 = vpack.c.bf16 %v2258_v25, %v2256_v24  ;;  %v2728_v19 = vld [vmem:[%s3713_s30 + $0x1da] ss:$2 sm:$0xff]  ;;  %v2549_v24 = vld [vmem:[%s3713_s30 + $0x231] ss:$2 sm:$0xff] }
  0x60   : > { %1181 = vmatprep.mubr.f32.mxu0 %v3408_v7  ;;  %v2709_v25 = vld [vmem:[%s3713_s30 + $0x242] ss:$2 sm:$0xff] }
  0x62   : > { %571 = vmatmul.mubr.f32.gmra.mrb[24].mxu1 %v2592_v31  ;;  %v2921_v31 = vpack.c.bf16 %v2263_v27, %v2261_v26  ;;  %v2553_v26 = vld [vmem:[%s3713_s30 + $0x251] ss:$2 sm:$0xff]  ;;  %v2713_v27 = vld [vmem:[%s3713_s30 + $0x262] ss:$2 sm:$0xff] }
  0x63   : > { %1182 = vmatmul.mubr.f32.gmra.mrb[24].mxu0 %v2656_v32  ;;  %576 = vmatprep.mubr.f32.mxu1 %v3408_v7  ;;  %v2260_v32 = vld [vmem:[%s4736_s3 + $0x60] sm:$0xff] }
  0x64   : > { %1187 = vmatprep.mubr.f32.mxu0 %v3408_v7 }
  0x66   : > { %577 = vmatmul.mubr.f32.gmra.mrb[26].mxu1 %v2596_v33  ;;  %v2262_v33 = vld [vmem:[%s4736_s3 + $0x70] sm:$0xff] }
  0x67   : > { %1188 = vmatmul.mubr.f32.gmra.mrb[26].mxu0 %v2660_v34  ;;  %582 = vmatprep.mubr.f32.mxu1 %v3408_v7  ;;  %v2265_v34 = vld [vmem:[%s4736_s3 + $0x88] sm:$0xff] }
  0x68   : > { %1193 = vmatprep.mubr.f32.mxu0 %v3408_v7 }
  0x6a   : > { %583 = vmatmul.mubr.f32.gmra.mrb[28].mxu1 %v2600_v35  ;;  %v2267_v35 = vld [vmem:[%s4736_s3 + $0x98] sm:$0xff] }
  0x6b   : > { %1194 = vmatmul.mubr.f32.gmra.mrb[28].mxu0 %v2664_v36  ;;  %588 = vmatprep.mubr.f32.mxu1 %v3408_v7  ;;  %v2555_v36 = vld [vmem:[%s3713_s30 + $0x61] ss:$2 sm:$0xff] }
  0x6c   : > { %1199 = vmatprep.mubr.f32.mxu0 %v3408_v7 }
  0x6e   : > { %589 = vmatmul.mubr.f32.gmra.mrb[30].mxu1 %v2604_v37  ;;  %v2715_v37 = vld [vmem:[%s3713_s30 + $0x72] ss:$2 sm:$0xff] }
  0x6f   : > { %1200 = vmatmul.mubr.f32.gmra.mrb[30].mxu0 %v2668_v38  ;;  %594 = vmatprep.mubr.f32.mxu1 %v3408_v7  ;;  %v2923_v38 = vpack.c.bf16 %v2262_v33, %v2260_v32  ;;  %v2565_v32 = vld [vmem:[%s3713_s30 + $0x2b1] ss:$2 sm:$0xff]  ;;  %v2725_v33 = vld [vmem:[%s3713_s30 + $0x2c2] ss:$2 sm:$0xff] }
  0x70   : > { %1205 = vmatprep.mubr.f32.mxu0 %v3408_v7 }
  0x72   : > { %595 = vmatmul.mubr.f32.gmra.mrb[32].mxu1 %v2577_v39  ;;  %v2925_v39 = vpack.c.bf16 %v2267_v35, %v2265_v34  ;;  %v2569_v34 = vld [vmem:[%s3713_s30 + $0x2d1] ss:$2 sm:$0xff]  ;;  %v2729_v35 = vld [vmem:[%s3713_s30 + $0x2e2] ss:$2 sm:$0xff] }
  0x73   : > { %1206 = vmatmul.mubr.f32.gmra.mrb[32].mxu0 %v2641_v40  ;;  %600 = vmatprep.mubr.f32.mxu1 %v3408_v7  ;;  %v2264_v40 = vld [vmem:[%s4736_s3 + $0x80] sm:$0xff] }
  0x74   : > { %1211 = vmatprep.mubr.f32.mxu0 %v3408_v7 }
  0x76   : > { %601 = vmatmul.mubr.f32.gmra.mrb[34].mxu1 %v2581_v41  ;;  %v2266_v41 = vld [vmem:[%s4736_s3 + $0x90] sm:$0xff] }
  0x77   : > { %1212 = vmatmul.mubr.f32.gmra.mrb[34].mxu0 %v2645_v42  ;;  %606 = vmatprep.mubr.f32.mxu1 %v3408_v7  ;;  %v2269_v42 = vld [vmem:[%s4736_s3 + $0xa8] sm:$0xff] }
  0x78   : > { %1217 = vmatprep.mubr.f32.mxu0 %v3408_v7 }
  0x7a   : > { %607 = vmatmul.mubr.f32.gmra.mrb[36].mxu1 %v2585_v43  ;;  %v2271_v43 = vld [vmem:[%s4736_s3 + $0xb8] sm:$0xff] }
  0x7b   : > { %1218 = vmatmul.mubr.f32.gmra.mrb[36].mxu0 %v2649_v44  ;;  %612 = vmatprep.mubr.f32.mxu1 %v3408_v7  ;;  %v2559_v44 = vld [vmem:[%s3713_s30 + $0x81] ss:$2 sm:$0xff] }
  0x7c   : > { %1223 = vmatprep.mubr.f32.mxu0 %v3408_v7 }
  0x7e   : > { %613 = vmatmul.mubr.f32.gmra.mrb[38].mxu1 %v2589_v45  ;;  %v2719_v45 = vld [vmem:[%s3713_s30 + $0x92] ss:$2 sm:$0xff] }
  0x7f   : > { %1224 = vmatmul.mubr.f32.gmra.mrb[38].mxu0 %v2653_v46  ;;  %618 = vmatprep.mubr.f32.mxu1 %v3408_v7  ;;  %v2927_v46 = vpack.c.bf16 %v2266_v41, %v2264_v40  ;;  %v2550_v40 = vld [vmem:[%s3713_s30 + $0x339] ss:$2 sm:$0xff]  ;;  %v2710_v41 = vld [vmem:[%s3713_s30 + $0x34a] ss:$2 sm:$0xff] }
  0x80   : > { %1229 = vmatprep.mubr.f32.mxu0 %v3408_v7 }
  0x82   : > { %619 = vmatmul.mubr.f32.gmra.mrb[40].mxu1 %v2593_v47  ;;  %v2929_v47 = vpack.c.bf16 %v2271_v43, %v2269_v42  ;;  %v2554_v42 = vld [vmem:[%s3713_s30 + $0x359] ss:$2 sm:$0xff]  ;;  %v2714_v43 = vld [vmem:[%s3713_s30 + $0x36a] ss:$2 sm:$0xff] }
  0x83   : > { %1230 = vmatmul.mubr.f32.gmra.mrb[40].mxu0 %v2657_v48  ;;  %624 = vmatprep.mubr.f32.mxu1 %v3408_v7  ;;  %v2268_v48 = vld [vmem:[%s4736_s3 + $0xa0] sm:$0xff] }
  0x84   : > { %1235 = vmatprep.mubr.f32.mxu0 %v3408_v7 }
  0x86   : > { %625 = vmatmul.mubr.f32.gmra.mrb[42].mxu1 %v2597_v49  ;;  %v2270_v49 = vld [vmem:[%s4736_s3 + $0xb0] sm:$0xff] }
  0x87   : > { %1236 = vmatmul.mubr.f32.gmra.mrb[42].mxu0 %v2661_v50  ;;  %630 = vmatprep.mubr.f32.mxu1 %v3408_v7  ;;  %v2273_v50 = vld [vmem:[%s4736_s3 + $0xc8] sm:$0xff] }
  0x88   : > { %1241 = vmatprep.mubr.f32.mxu0 %v3408_v7 }
  0x8a   : > { %631 = vmatmul.mubr.f32.gmra.mrb[44].mxu1 %v2601_v51  ;;  %v2275_v51 = vld [vmem:[%s4736_s3 + $0xd8] sm:$0xff] }
  0x8b   : > { %1242 = vmatmul.mubr.f32.gmra.mrb[44].mxu0 %v2665_v52  ;;  %636 = vmatprep.mubr.f32.mxu1 %v3408_v7  ;;  %v2563_v52 = vld [vmem:[%s3713_s30 + $0xa1] ss:$2 sm:$0xff] }
  0x8c   : > { %1247 = vmatprep.mubr.f32.mxu0 %v3408_v7 }
  0x8e   : > { %637 = vmatmul.mubr.f32.gmra.mrb[46].mxu1 %v2605_v53  ;;  %v2723_v53 = vld [vmem:[%s3713_s30 + $0xb2] ss:$2 sm:$0xff] }
  0x8f   : > { %1248 = vmatmul.mubr.f32.gmra.mrb[46].mxu0 %v2669_v54  ;;  %642 = vmatprep.mubr.f32.mxu1 %v3408_v7  ;;  %v2931_v54 = vpack.c.bf16 %v2270_v49, %v2268_v48  ;;  %v2245_v48 = vld [vmem:[%s3713_s30 + $0x108] sm:$0x1]  ;;  %v2566_v49 = vld [vmem:[%s3713_s30 + $0x3b9] ss:$2 sm:$0xff] }
  0x90   : > { %1253 = vmatprep.mubr.f32.mxu0 %v3408_v7 }
  0x92   : > { %643 = vmatmul.mubr.f32.gmra.mrb[48].mxu1 %v2578_v55  ;;  %v2933_v55 = vpack.c.bf16 %v2275_v51, %v2273_v50  ;;  %v2726_v50 = vld [vmem:[%s3713_s30 + $0x3ca] ss:$2 sm:$0xff] }
  0x93   : > { %1254 = vmatmul.mubr.f32.gmra.mrb[48].mxu0 %v2642_v56  ;;  %648 = vmatprep.mubr.f32.mxu1 %v3408_v7  ;;  %v2272_v56 = vld [vmem:[%s4736_s3 + $0xc0] sm:$0xff]  ;;  %v2246_v51 = vld [vmem:[%s3713_s30 + $0x210] sm:$0x1] }
  0x94   : > { %1259 = vmatprep.mubr.f32.mxu0 %v3408_v7 }
  0x96   : > { %649 = vmatmul.mubr.f32.gmra.mrb[50].mxu1 %v2582_v57  ;;  %v2274_v57 = vld [vmem:[%s4736_s3 + $0xd0] sm:$0xff] }
  0x97   : > { %1260 = vmatmul.mubr.f32.gmra.mrb[50].mxu0 %v2646_v58  ;;  %654 = vmatprep.mubr.f32.mxu1 %v3408_v7  ;;  %v2277_v58 = vld [vmem:[%s4736_s3 + $0xe8] sm:$0xff] }
  0x98   : > { %1265 = vmatprep.mubr.f32.mxu0 %v3408_v7 }
  0x9a   : > { %655 = vmatmul.mubr.f32.gmra.mrb[52].mxu1 %v2586_v59  ;;  %v2279_v59 = vld [vmem:[%s4736_s3 + $0xf8] sm:$0xff] }
  0x9b   : > { %1266 = vmatmul.mubr.f32.gmra.mrb[52].mxu0 %v2650_v60  ;;  %660 = vmatprep.mubr.f32.mxu1 %v3408_v7  ;;  %v2567_v60 = vld [vmem:[%s3713_s30 + $0xc1] ss:$2 sm:$0xff] }
  0x9c   : > { %1271 = vmatprep.mubr.f32.mxu0 %v3408_v7 }
  0x9e   : > { %661 = vmatmul.mubr.f32.gmra.mrb[54].mxu1 %v2590_v61  ;;  %v2727_v61 = vld [vmem:[%s3713_s30 + $0xd2] ss:$2 sm:$0xff] }
  0x9f   : > { %1272 = vmatmul.mubr.f32.gmra.mrb[54].mxu0 %v2654_v62  ;;  %666 = vmatprep.mubr.f32.mxu1 %v3408_v7  ;;  %v2935_v62 = vpack.c.bf16 %v2274_v57, %v2272_v56  ;;  %v2247_v56 = vld [vmem:[%s3713_s30 + $0x318] sm:$0x1]  ;;  %v2287_v57 = vrot.slane %v2246_v51, 6 }
  0xa0   : > { %1277 = vmatprep.mubr.f32.mxu0 %v3408_v7 }
  0xa2   : > { %667 = vmatmul.mubr.f32.gmra.mrb[56].mxu1 %v2594_v63  ;;  %v2937_v63 = vpack.c.bf16 %v2279_v59, %v2277_v58  ;;  %v2574_v59 = vld [vmem:[%s3713_s30 + $0x3f9] ss:$2 sm:$0xff] }
  0xa3   : > { %1278 = vmatmul.mubr.f32.gmra.mrb[56].mxu0 %v2658_v0  ;;  %672 = vmatprep.mubr.f32.mxu1 %v3408_v7  ;;  %v2276_v0 = vld [vmem:[%s4736_s3 + $0xe0] sm:$0xff] }
  0xa4   : > { %1283 = vmatprep.mubr.f32.mxu0 %v3408_v7 }
  0xa6   : > { %673 = vmatmul.mubr.f32.gmra.mrb[58].mxu1 %v2598_v1  ;;  %v2278_v1 = vld [vmem:[%s4736_s3 + $0xf0] sm:$0xff] }
  0xa7   : > { %1284 = vmatmul.mubr.f32.gmra.mrb[58].mxu0 %v2662_v2  ;;  %678 = vmatprep.mubr.f32.mxu1 %v3408_v7  ;;  %v2571_v2 = vld [vmem:[%s3713_s30 + $0xe1] ss:$2 sm:$0xff] }
  0xa8   : > { %1289 = vmatprep.mubr.f32.mxu0 %v3408_v7 }
  0xaa   : > { %679 = vmatmul.mubr.f32.gmra.mrb[60].mxu1 %v2602_v3  ;;  %v2731_v3 = vld [vmem:[%s3713_s30 + $0xf2] ss:$2 sm:$0xff] }
  0xab   : > { %1290 = vmatmul.mubr.f32.gmra.mrb[60].mxu0 %v2666_v4  ;;  %684 = vmatprep.mubr.f32.mxu1 %v3408_v7  ;;  %v2939_v4 = vpack.c.bf16 %v2278_v1, %v2276_v0  ;;  %v1786_v0 = vlaneseq }
  0xac   : > { %1295 = vmatprep.mubr.f32.mxu0 %v3408_v7 }
  0xad   : > { %v4251_v1 = vshrl.u32 %v1786_v0, 7  ;;  %vm4625_vm3 = vcmp.lt.s32.totalorder %v1786_v0, 256 }
  0xae   : > { %685 = vmatmul.mubr.f32.gmra.mrb[62].mxu1 %v2606_v5  ;;  %v2544_v5 = vld [vmem:[%s3713_s30 + $0x109] ss:$2 sm:$0xff] }
  0xaf   : > { %1296 = vmatmul.mubr.f32.gmra.mrb[62].mxu0 %v2670_v6  ;;  %755 = vmatprep.mubr.f32.mxu1 %v3408_v7  ;;  %v2704_v6 = vld [vmem:[%s3713_s30 + $0x11a] ss:$2 sm:$0xff] }
  0xb0   : > { %1527 = vmatprep.mubr.f32.mxu0 %v3408_v7 }
  0xb2   : > { %756 = vmatmul.mubr.f32.vlgmr.msra.gmra.mrb[0].mxu1 %v2543_v12  ;;  %v2556_v12 = vld [vmem:[%s3713_s30 + $0x169] ss:$2 sm:$0xff] }
  0xb3   : > { %1528 = vmatmul.mubr.f32.vlgmr.msra.gmra.mrb[0].mxu0 %v2703_v13  ;;  %761 = vmatprep.mubr.f32.mxu1 %v3408_v7  ;;  %v2716_v13 = vld [vmem:[%s3713_s30 + $0x17a] ss:$2 sm:$0xff] }
  0xb4   : > { %1533 = vmatprep.mubr.f32.mxu0 %v3408_v7  ;;  %2912 = vmatpush1.bf16.msra.mxu1 %v2911_v14  ;;  %v2560_v14 = vld [vmem:[%s3713_s30 + $0x189] ss:$2 sm:$0xff] }
  0xb5   : > { %2914 = vmatprep.subr.bf16.mxu1 %v2913_v15  ;;  %v2720_v15 = vld [vmem:[%s3713_s30 + $0x19a] ss:$2 sm:$0xff] }
  0xb6   : > { %762 = vmatmul.mubr.f32.gmra.mrb[2].mxu1 %v2547_v20  ;;  %v2572_v20 = vld [vmem:[%s3713_s30 + $0x1e9] ss:$2 sm:$0xff] }
  0xb7   : > { %1534 = vmatmul.mubr.f32.gmra.mrb[2].mxu0 %v2707_v21  ;;  %767 = vmatprep.mubr.f32.mxu1 %v3408_v7  ;;  %v2732_v21 = vld [vmem:[%s3713_s30 + $0x1fa] ss:$2 sm:$0xff] }
  0xb8   : > { %1539 = vmatprep.mubr.f32.mxu0 %v3408_v7  ;;  %2916 = vmatpush1.bf16.msra.mxu1 %v2915_v22  ;;  %v2545_v22 = vld [vmem:[%s3713_s30 + $0x211] ss:$2 sm:$0xff] }
  0xb9   : > { %2918 = vmatprep.subr.bf16.mxu1 %v2917_v23  ;;  %v2705_v23 = vld [vmem:[%s3713_s30 + $0x222] ss:$2 sm:$0xff] }
  0xba   : > { %768 = vmatmul.mubr.f32.gmra.mrb[4].mxu1 %v2551_v28  ;;  %v2557_v28 = vld [vmem:[%s3713_s30 + $0x271] ss:$2 sm:$0xff] }
  0xbb   : > { %1540 = vmatmul.mubr.f32.gmra.mrb[4].mxu0 %v2711_v29  ;;  %773 = vmatprep.mubr.f32.mxu1 %v3408_v7  ;;  %v2717_v29 = vld [vmem:[%s3713_s30 + $0x282] ss:$2 sm:$0xff] }
  0xbc   : > { %1545 = vmatprep.mubr.f32.mxu0 %v3408_v7  ;;  %2920 = vmatpush1.bf16.msra.mxu1 %v2919_v30  ;;  %v2561_v30 = vld [vmem:[%s3713_s30 + $0x291] ss:$2 sm:$0xff] }
  0xbd   : > { %2922 = vmatprep.subr.bf16.mxu1 %v2921_v31  ;;  %v2721_v31 = vld [vmem:[%s3713_s30 + $0x2a2] ss:$2 sm:$0xff] }
  0xbe   : > { %774 = vmatmul.mubr.f32.gmra.mrb[6].mxu1 %v2555_v36  ;;  %v2573_v36 = vld [vmem:[%s3713_s30 + $0x2f1] ss:$2 sm:$0xff] }
  0xbf   : > { %1546 = vmatmul.mubr.f32.gmra.mrb[6].mxu0 %v2715_v37  ;;  %779 = vmatprep.mubr.f32.mxu1 %v3408_v7  ;;  %v2733_v37 = vld [vmem:[%s3713_s30 + $0x302] ss:$2 sm:$0xff] }
  0xc0   : > { %1551 = vmatprep.mubr.f32.mxu0 %v3408_v7  ;;  %2924 = vmatpush1.bf16.msra.mxu1 %v2923_v38  ;;  %v2546_v38 = vld [vmem:[%s3713_s30 + $0x319] ss:$2 sm:$0xff] }
  0xc1   : > { %2926 = vmatprep.subr.bf16.mxu1 %v2925_v39  ;;  %v2706_v39 = vld [vmem:[%s3713_s30 + $0x32a] ss:$2 sm:$0xff] }
  0xc2   : > { %780 = vmatmul.mubr.f32.gmra.mrb[8].mxu1 %v2559_v44  ;;  %v2558_v44 = vld [vmem:[%s3713_s30 + $0x379] ss:$2 sm:$0xff] }
  0xc3   : > { %1552 = vmatmul.mubr.f32.gmra.mrb[8].mxu0 %v2719_v45  ;;  %785 = vmatprep.mubr.f32.mxu1 %v3408_v7  ;;  %v2718_v45 = vld [vmem:[%s3713_s30 + $0x38a] ss:$2 sm:$0xff] }
  0xc4   : > { %1557 = vmatprep.mubr.f32.mxu0 %v3408_v7  ;;  %2928 = vmatpush1.bf16.msra.mxu1 %v2927_v46  ;;  %v2562_v46 = vld [vmem:[%s3713_s30 + $0x399] ss:$2 sm:$0xff] }
  0xc5   : > { %2930 = vmatprep.subr.bf16.mxu1 %v2929_v47  ;;  %v2722_v47 = vld [vmem:[%s3713_s30 + $0x3aa] ss:$2 sm:$0xff] }
  0xc6   : > { %786 = vmatmul.mubr.f32.gmra.mrb[10].mxu1 %v2563_v52  ;;  %v2284_v52 = vrot.slane %v2245_v48, 7 }
  0xc7   : > { %1558 = vmatmul.mubr.f32.gmra.mrb[10].mxu0 %v2723_v53  ;;  %791 = vmatprep.mubr.f32.mxu1 %v3408_v7  ;;  %v2244_v53 = vld [vmem:[%s3713_s30] sm:$0x1] }
  0xc8   : > { %1563 = vmatprep.mubr.f32.mxu0 %v3408_v7  ;;  %2932 = vmatpush1.bf16.msra.mxu1 %v2931_v54  ;;  %v2570_v54 = vld [vmem:[%s3713_s30 + $0x3d9] ss:$2 sm:$0xff]  ;;  %v2286_v58 = vsel %vm2285_vm0, %v2284_v52, %v2244_v53 }
  0xc9   : > { %2934 = vmatprep.subr.bf16.mxu1 %v2933_v55  ;;  %v2730_v55 = vld [vmem:[%s3713_s30 + $0x3ea] ss:$2 sm:$0xff] }
  0xca   : > { %792 = vmatmul.mubr.f32.gmra.mrb[12].mxu1 %v2567_v60  ;;  %v2290_v60 = vrot.slane %v2247_v56, 5 }
  0xcb   : > { %1564 = vmatmul.mubr.f32.gmra.mrb[12].mxu0 %v2727_v61  ;;  %797 = vmatprep.mubr.f32.mxu1 %v3408_v7  ;;  %v2734_v61 = vld [vmem:[%s3713_s30 + $0x40a] ss:$2 sm:$0xff]  ;;  %s4273_s30 = sand.u32 1, %s3398_s19  }
  0xcc   : > { %1569 = vmatprep.mubr.f32.mxu0 %v3408_v7  ;;  %2936 = vmatpush1.bf16.msra.mxu1 %v2935_v62  ;;  %v2289_v62 = vsel %vm2288_vm1, %v2287_v57, %v2286_v58  ;;  %s2539_s14 = sshll.u32 %s4273_s30, 9  ;;  %s2540_s15 = sshll.u32 %s4273_s30, 3 }
  0xcd   : > { %2938 = vmatprep.subr.bf16.mxu1 %v2937_v63  ;;  %v2292_v63 = vsel %vm2291_vm2, %v2290_v60, %v2289_v62  ;;  %s4293_s8 = scalar_lea.vmem [#allocation2], %s2539_s14  ;;  %s231_s16 = scalar_lea.vmem [#allocation4], %s2540_s15 }
  0xce   : > { %798 = vmatmul.mubr.f32.gmra.mrb[14].mxu1 %v2571_v2  ;;  %v1788_v2 = vsub.s32 0, %v4251_v1  ;;  %s2441_s17 = sshll.u32 %s231_s16, 4  ;;  %s2410_s6 = scalar_lea.sflag [#allocation5], %s4273_s30  ;;  %s4641_s17 = int_to_ptr.vmem [resolvable:$true] %s2441_s17 }
  0xcf   : > { %1570 = vmatmul.mubr.f32.gmra.mrb[14].mxu0 %v2731_v3  ;;  %803 = vmatprep.mubr.f32.mxu1 %v3408_v7  ;;  %v1784_v3 = vld [vmem:[%s4735_s2] sm:$0x3]  ;;  %s3312_s7 = scalar_lea.vmem %s4641_s17, 128  ;;  %p3319_p0 = scmp.lt.s32.totalorder %s4641_s17, %s3317_s11 }
  0xd0   : > { %1575 = vmatprep.mubr.f32.mxu0 %v3408_v7  ;;  %2940 = vmatpush1.bf16.msra.mxu1 %v2939_v4  ;;  %v1792_v4 = vsub.s32 1, %v4251_v1  ;;  %p3313_p11 = scmp.ne.s32.totalorder %s4641_s17, %s3312_s7  ;;  %p3320_p1 = scmp.lt.s32.totalorder %s3318_s12, %s3312_s7 }
  0xd2   : > { %804 = vmatmul.mubr.f32.gmra.mrb[16].mxu1 %v2544_v5  ;;  %p3314_p12 = pnand %p3313_p11, %p3484_p5  ;;  %p3321_p2 = por %p3320_p1, %p3319_p0 }
  0xd3   : > { %1576 = vmatmul.mubr.f32.gmra.mrb[16].mxu0 %v2704_v6  ;;  %809 = vmatprep.mubr.f32.mxu1 %v3408_v7  ;;  %v4258_v6 = vrot.slane %v1784_v3, %v1788_v2 }
  0xd4   : > { %1581 = vmatprep.mubr.f32.mxu0 %v3408_v7  ;;  %p3315_p13 = pneg %p3314_p12 }
  0xd6   : > { %810 = vmatmul.mubr.f32.gmra.mrb[18].mxu1 %v2548_v8  ;;  %p3322_p3 = pnand %p3321_p2, %p3315_p13 }
  0xd7   : > { %1582 = vmatmul.mubr.f32.gmra.mrb[18].mxu0 %v2708_v9  ;;  %815 = vmatprep.mubr.f32.mxu1 %v3408_v7 }
  0xd8   : > { %1587 = vmatprep.mubr.f32.mxu0 %v3408_v7 }
  0xda   : > { %816 = vmatmul.mubr.f32.gmra.mrb[20].mxu1 %v2552_v10 }
  0xdb   : > { %1588 = vmatmul.mubr.f32.gmra.mrb[20].mxu0 %v2712_v11  ;;  %821 = vmatprep.mubr.f32.mxu1 %v3408_v7 }
  0xdc   : > { %1593 = vmatprep.mubr.f32.mxu0 %v3408_v7 }
  0xde   : > { %822 = vmatmul.mubr.f32.gmra.mrb[22].mxu1 %v2556_v12 }
  0xdf   : > { %1594 = vmatmul.mubr.f32.gmra.mrb[22].mxu0 %v2716_v13  ;;  %827 = vmatprep.mubr.f32.mxu1 %v3408_v7 }
  0xe0   : > { %1599 = vmatprep.mubr.f32.mxu0 %v3408_v7 }
  0xe2   : > { %828 = vmatmul.mubr.f32.gmra.mrb[24].mxu1 %v2560_v14 }
  0xe3   : > { %1600 = vmatmul.mubr.f32.gmra.mrb[24].mxu0 %v2720_v15  ;;  %833 = vmatprep.mubr.f32.mxu1 %v3408_v7 }
  0xe4   : > { %1605 = vmatprep.mubr.f32.mxu0 %v3408_v7 }
  0xe6   : > { %834 = vmatmul.mubr.f32.gmra.mrb[26].mxu1 %v2564_v16 }
  0xe7   : > { %1606 = vmatmul.mubr.f32.gmra.mrb[26].mxu0 %v2724_v17  ;;  %839 = vmatprep.mubr.f32.mxu1 %v3408_v7 }
  0xe8   : > { %1611 = vmatprep.mubr.f32.mxu0 %v3408_v7 }
  0xea   : > { %840 = vmatmul.mubr.f32.gmra.mrb[28].mxu1 %v2568_v18 }
  0xeb   : > { %1612 = vmatmul.mubr.f32.gmra.mrb[28].mxu0 %v2728_v19  ;;  %845 = vmatprep.mubr.f32.mxu1 %v3408_v7 }
  0xec   : > { %1617 = vmatprep.mubr.f32.mxu0 %v3408_v7 }
  0xee   : > { %846 = vmatmul.mubr.f32.gmra.mrb[30].mxu1 %v2572_v20 }
  0xef   : > { %1618 = vmatmul.mubr.f32.gmra.mrb[30].mxu0 %v2732_v21  ;;  %851 = vmatprep.mubr.f32.mxu1 %v3408_v7 }
  0xf0   : > { %1623 = vmatprep.mubr.f32.mxu0 %v3408_v7 }
  0xf2   : > { %852 = vmatmul.mubr.f32.gmra.mrb[32].mxu1 %v2545_v22 }
  0xf3   : > { %1624 = vmatmul.mubr.f32.gmra.mrb[32].mxu0 %v2705_v23  ;;  %857 = vmatprep.mubr.f32.mxu1 %v3408_v7 }
  0xf4   : > { %1629 = vmatprep.mubr.f32.mxu0 %v3408_v7 }
  0xf6   : > { %858 = vmatmul.mubr.f32.gmra.mrb[34].mxu1 %v2549_v24 }
  0xf7   : > { %1630 = vmatmul.mubr.f32.gmra.mrb[34].mxu0 %v2709_v25  ;;  %863 = vmatprep.mubr.f32.mxu1 %v3408_v7 }
  0xf8   : > { %1635 = vmatprep.mubr.f32.mxu0 %v3408_v7 }
  0xfa   : > { %864 = vmatmul.mubr.f32.gmra.mrb[36].mxu1 %v2553_v26 }
  0xfb   : > { %1636 = vmatmul.mubr.f32.gmra.mrb[36].mxu0 %v2713_v27  ;;  %869 = vmatprep.mubr.f32.mxu1 %v3408_v7 }
  0xfc   : > { %1641 = vmatprep.mubr.f32.mxu0 %v3408_v7 }
  0xfe   : > { %870 = vmatmul.mubr.f32.gmra.mrb[38].mxu1 %v2557_v28 }
  0xff   : > { %1642 = vmatmul.mubr.f32.gmra.mrb[38].mxu0 %v2717_v29  ;;  %875 = vmatprep.mubr.f32.mxu1 %v3408_v7 }
 0x100   : > { %1647 = vmatprep.mubr.f32.mxu0 %v3408_v7 }
 0x102   : > { %876 = vmatmul.mubr.f32.gmra.mrb[40].mxu1 %v2561_v30 }
 0x103   : > { %1648 = vmatmul.mubr.f32.gmra.mrb[40].mxu0 %v2721_v31  ;;  %881 = vmatprep.mubr.f32.mxu1 %v3408_v7 }
 0x104   : > { %1653 = vmatprep.mubr.f32.mxu0 %v3408_v7 }
 0x106   : > { %882 = vmatmul.mubr.f32.gmra.mrb[42].mxu1 %v2565_v32 }
 0x107   : > { %1654 = vmatmul.mubr.f32.gmra.mrb[42].mxu0 %v2725_v33  ;;  %887 = vmatprep.mubr.f32.mxu1 %v3408_v7 }
 0x108   : > { %1659 = vmatprep.mubr.f32.mxu0 %v3408_v7 }
 0x10a   : > { %888 = vmatmul.mubr.f32.gmra.mrb[44].mxu1 %v2569_v34 }
 0x10b   : > { %1660 = vmatmul.mubr.f32.gmra.mrb[44].mxu0 %v2729_v35  ;;  %893 = vmatprep.mubr.f32.mxu1 %v3408_v7 }
 0x10c   : > { %1665 = vmatprep.mubr.f32.mxu0 %v3408_v7 }
 0x10e   : > { %894 = vmatmul.mubr.f32.gmra.mrb[46].mxu1 %v2573_v36 }
 0x10f   : > { %1666 = vmatmul.mubr.f32.gmra.mrb[46].mxu0 %v2733_v37  ;;  %899 = vmatprep.mubr.f32.mxu1 %v3408_v7 }
 0x110   : > { %1671 = vmatprep.mubr.f32.mxu0 %v3408_v7 }
 0x112   : > { %900 = vmatmul.mubr.f32.gmra.mrb[48].mxu1 %v2546_v38 }
 0x113   : > { %1672 = vmatmul.mubr.f32.gmra.mrb[48].mxu0 %v2706_v39  ;;  %905 = vmatprep.mubr.f32.mxu1 %v3408_v7 }
 0x114   : > { %1677 = vmatprep.mubr.f32.mxu0 %v3408_v7 }
 0x116   : > { %906 = vmatmul.mubr.f32.gmra.mrb[50].mxu1 %v2550_v40 }
 0x117   : > { %1678 = vmatmul.mubr.f32.gmra.mrb[50].mxu0 %v2710_v41  ;;  %911 = vmatprep.mubr.f32.mxu1 %v3408_v7 }
 0x118   : > { %1683 = vmatprep.mubr.f32.mxu0 %v3408_v7 }
 0x11a   : > { %912 = vmatmul.mubr.f32.gmra.mrb[52].mxu1 %v2554_v42 }
 0x11b   : > { %1684 = vmatmul.mubr.f32.gmra.mrb[52].mxu0 %v2714_v43  ;;  %917 = vmatprep.mubr.f32.mxu1 %v3408_v7 }
 0x11c   : > { %1689 = vmatprep.mubr.f32.mxu0 %v3408_v7 }
 0x11e   : > { %918 = vmatmul.mubr.f32.gmra.mrb[54].mxu1 %v2558_v44 }
 0x11f   : > { %1690 = vmatmul.mubr.f32.gmra.mrb[54].mxu0 %v2718_v45  ;;  %923 = vmatprep.mubr.f32.mxu1 %v3408_v7 }
 0x120   : > { %1695 = vmatprep.mubr.f32.mxu0 %v3408_v7 }
 0x122   : > { %924 = vmatmul.mubr.f32.gmra.mrb[56].mxu1 %v2562_v46 }
 0x123   : > { %1696 = vmatmul.mubr.f32.gmra.mrb[56].mxu0 %v2722_v47  ;;  %929 = vmatprep.mubr.f32.mxu1 %v3408_v7 }
 0x124   : > { %1701 = vmatprep.mubr.f32.mxu0 %v3408_v7 }
 0x126   : > { %930 = vmatmul.mubr.f32.gmra.mrb[58].mxu1 %v2566_v49 }
 0x127   : > { %1702 = vmatmul.mubr.f32.gmra.mrb[58].mxu0 %v2726_v50  ;;  %935 = vmatprep.mubr.f32.mxu1 %v3408_v7 }
 0x128   : > { %1707 = vmatprep.mubr.f32.mxu0 %v3408_v7 }
 0x12a   : > { %936 = vmatmul.mubr.f32.gmra.mrb[60].mxu1 %v2570_v54 }
 0x12b   : > { %1708 = vmatmul.mubr.f32.gmra.mrb[60].mxu0 %v2730_v55  ;;  %941 = vmatprep.mubr.f32.mxu1 %v3408_v7 }
 0x12c   : > { %1713 = vmatprep.mubr.f32.mxu0 %v3408_v7 }
 0x12e   : > { %942 = vmatmul.mubr.f32.gmra.mrb[62].mxu1 %v2574_v59 }
 0x12f   : > { %1714 = vmatmul.mubr.f32.gmra.mrb[62].mxu0 %v2734_v61  ;;  %2358 = vmatprep.mubr.f32.mxu1 %v3408_v7  ;;  %v4260_v7 = vrot.slane %v1784_v3, %v1792_v4 }
 0x132   : > { %2359 = vmatmul.mubr.f32.vlgmr.msra.gmra.mrb[64].mxu1 %v2292_v63 }
 0x185   : > { %v757_v5 = vpop.f32.mrb[0].mxu1 }
 0x186   : > { %v1529_v8 = vpop.f32.mrb[0].mxu0  ;;  %v759_v9 = vpop.f32.mrb[1].mxu1 }
 0x187   : > { %v2941_v10 = vadd.f32 %v1529_v8, %v757_v5  ;;  %v1531_v11 = vpop.f32.mrb[1].mxu0 }
 0x188   : > { %v2942_v12 = vadd.f32 %v1531_v11, %v759_v9 }
 0x189   : > { %v1796_v13 = vadd.f32 %v2941_v10, %v4258_v6  ;;  %v763_v14 = vpop.f32.mrb[2].mxu1 }
 0x18a   : > { %v1797_v15 = vadd.f32 %v2942_v12, %v4260_v7  ;;  %v1535_v16 = vpop.f32.mrb[2].mxu0  ;;  %v765_v17 = vpop.f32.mrb[3].mxu1 }
 0x18b   : > { %v1924_v18 = vmul.f32 0.70710677, %v1796_v13  ;;  %v2943_v19 = vadd.f32 %v1535_v16, %v763_v14  ;;  %v1537_v20 = vpop.f32.mrb[3].mxu0  ;;  %v1860_v53 = vmul.f32 0.5, %v1796_v13 }
 0x18c   : > { %v1925_v21 = vmul.f32 0.70710677, %v1797_v15  ;;  %v2944_v22 = vadd.f32 %v1537_v20, %v765_v17  ;;  %v1861_v57 = vmul.f32 0.5, %v1797_v15 }
 0x18d   : > { %3184 = verf.f32 %v1924_v18  ;;  %v1798_v23 = vadd.f32 %v2943_v19, %v4258_v6  ;;  %v769_v24 = vpop.f32.mrb[4].mxu1 }
 0x18e   : > { %3186 = verf.f32 %v1925_v21  ;;  %v1799_v25 = vadd.f32 %v2944_v22, %v4260_v7  ;;  %v1541_v26 = vpop.f32.mrb[4].mxu0  ;;  %v771_v27 = vpop.f32.mrb[5].mxu1 }
 0x18f   : > { %v1926_v28 = vmul.f32 0.70710677, %v1798_v23  ;;  %v2945_v29 = vadd.f32 %v1541_v26, %v769_v24  ;;  %v1543_v30 = vpop.f32.mrb[5].mxu0  ;;  %v1862_v11 = vmul.f32 0.5, %v1798_v23 }
 0x190   : > { %v1927_v31 = vmul.f32 0.70710677, %v1799_v25  ;;  %v2946_v32 = vadd.f32 %v1543_v30, %v771_v27  ;;  %v1863_v15 = vmul.f32 0.5, %v1799_v25 }
 0x191   : > { %3188 = verf.f32 %v1926_v28  ;;  %v4267_v33 = vadd.f32 %v2945_v29, %v4258_v6  ;;  %v775_v34 = vpop.f32.mrb[6].mxu1 }
 0x192   : > { %3190 = verf.f32 %v1927_v31  ;;  %v4270_v35 = vadd.f32 %v2946_v32, %v4260_v7  ;;  %v1547_v36 = vpop.f32.mrb[6].mxu0  ;;  %v777_v37 = vpop.f32.mrb[7].mxu1 }
 0x193   : > { %v1928_v38 = vmul.f32 0.70710677, %v4267_v33  ;;  %v2947_v39 = vadd.f32 %v1547_v36, %v775_v34  ;;  %v1549_v40 = vpop.f32.mrb[7].mxu0  ;;  %v1864_v29 = vmul.f32 0.5, %v4267_v33 }
 0x194   : > { %v1929_v41 = vmul.f32 0.70710677, %v4270_v35  ;;  %v2948_v42 = vadd.f32 %v1549_v40, %v777_v37  ;;  %v1865_v34 = vmul.f32 0.5, %v4270_v35 }
 0x195   : > { %3192 = verf.f32 %v1928_v38  ;;  %v4278_v43 = vadd.f32 %v2947_v39, %v4258_v6  ;;  %v781_v44 = vpop.f32.mrb[8].mxu1 }
 0x196   : > { %3194 = verf.f32 %v1929_v41  ;;  %v4282_v45 = vadd.f32 %v2948_v42, %v4260_v7  ;;  %v1553_v46 = vpop.f32.mrb[8].mxu0  ;;  %v783_v47 = vpop.f32.mrb[9].mxu1 }
 0x197   : > { %v3185_v48 = vpop.eup %3184  ;;  %v1930_v49 = vmul.f32 0.70710677, %v4278_v43  ;;  %v2949_v50 = vadd.f32 %v1553_v46, %v781_v44  ;;  %v1555_v51 = vpop.f32.mrb[9].mxu0 }
 0x198   : > { %v3187_v52 = vpop.eup %3186  ;;  %v2052_v54 = vadd.f32 1.0, %v3185_v48  ;;  %v1931_v55 = vmul.f32 0.70710677, %v4282_v45  ;;  %v2950_v56 = vadd.f32 %v1555_v51, %v783_v47 }
 0x199   : > { %v2053_v58 = vadd.f32 1.0, %v3187_v52  ;;  %3196 = verf.f32 %v1930_v49  ;;  %v4287_v59 = vadd.f32 %v2949_v50, %v4258_v6  ;;  %v787_v60 = vpop.f32.mrb[10].mxu1  ;;  %v1866_v49 = vmul.f32 0.5, %v4278_v43 }
 0x19a   : > { %v2116_v61 = vmul.f32 %v2052_v54, %v1860_v53  ;;  %3198 = verf.f32 %v1931_v55  ;;  %v4290_v62 = vadd.f32 %v2950_v56, %v4260_v7  ;;  %v1559_v63 = vpop.f32.mrb[10].mxu0  ;;  %v789_v2 = vpop.f32.mrb[11].mxu1  ;;  %v1867_v53 = vmul.f32 0.5, %v4282_v45 }
 0x19b   : > { %v3189_v3 = vpop.eup %3188  ;;  %v2117_v4 = vmul.f32 %v2053_v58, %v1861_v57  ;;  %v1932_v5 = vmul.f32 0.70710677, %v4287_v59  ;;  %v2951_v8 = vadd.f32 %v1559_v63, %v787_v60  ;;  %v1561_v9 = vpop.f32.mrb[11].mxu0 }
 0x19c   : > { %v3191_v10 = vpop.eup %3190  ;;  %2180 = vst [vmem:[%s4293_s8] sm:$0xff] %v2116_v61  ;;  %v2054_v12 = vadd.f32 1.0, %v3189_v3  ;;  %v1933_v13 = vmul.f32 0.70710677, %v4290_v62  ;;  %v2952_v14 = vadd.f32 %v1561_v9, %v789_v2 }
 0x19d   : > { %2181 = vst [vmem:[%s4293_s8 + $0x8] sm:$0xff] %v2117_v4  ;;  %v2055_v16 = vadd.f32 1.0, %v3191_v10  ;;  %3200 = verf.f32 %v1932_v5  ;;  %v4299_v17 = vadd.f32 %v2951_v8, %v4258_v6  ;;  %v793_v18 = vpop.f32.mrb[12].mxu1  ;;  %v1868_v5 = vmul.f32 0.5, %v4287_v59 }
 0x19e   : > { %v2118_v19 = vmul.f32 %v2054_v12, %v1862_v11  ;;  %3202 = verf.f32 %v1933_v13  ;;  %v4302_v20 = vadd.f32 %v2952_v14, %v4260_v7  ;;  %v1565_v21 = vpop.f32.mrb[12].mxu0  ;;  %v795_v22 = vpop.f32.mrb[13].mxu1  ;;  %v1869_v11 = vmul.f32 0.5, %v4290_v62 }
 0x19f   : > { %v3193_v23 = vpop.eup %3192  ;;  %v2119_v24 = vmul.f32 %v2055_v16, %v1863_v15  ;;  %v1934_v26 = vmul.f32 0.70710677, %v4299_v17  ;;  %v2953_v25 = vadd.f32 %v1565_v21, %v793_v18  ;;  %v1567_v27 = vpop.f32.mrb[13].mxu0 }
 0x1a0   : > { %v3195_v28 = vpop.eup %3194  ;;  %2182 = vst [vmem:[%s4293_s8 + $0x10] sm:$0xff] %v2118_v19  ;;  %v2056_v30 = vadd.f32 1.0, %v3193_v23  ;;  %v1935_v31 = vmul.f32 0.70710677, %v4302_v20  ;;  %v2954_v32 = vadd.f32 %v1567_v27, %v795_v22 }
 0x1a1   : > { %2183 = vst [vmem:[%s4293_s8 + $0x18] sm:$0xff] %v2119_v24  ;;  %v2057_v36 = vadd.f32 1.0, %v3195_v28  ;;  %3204 = verf.f32 %v1934_v26  ;;  %v4311_v37 = vadd.f32 %v2953_v25, %v4258_v6  ;;  %v799_v38 = vpop.f32.mrb[14].mxu1  ;;  %v1870_v26 = vmul.f32 0.5, %v4299_v17 }
 0x1a2   : > { %v2120_v39 = vmul.f32 %v2056_v30, %v1864_v29  ;;  %3206 = verf.f32 %v1935_v31  ;;  %v4314_v40 = vadd.f32 %v2954_v32, %v4260_v7  ;;  %v1571_v33 = vpop.f32.mrb[14].mxu0  ;;  %v801_v41 = vpop.f32.mrb[15].mxu1  ;;  %v1871_v29 = vmul.f32 0.5, %v4302_v20 }
 0x1a3   : > { %v3197_v42 = vpop.eup %3196  ;;  %v2121_v44 = vmul.f32 %v2057_v36, %v1865_v34  ;;  %v1936_v46 = vmul.f32 0.70710677, %v4311_v37  ;;  %v2955_v35 = vadd.f32 %v1571_v33, %v799_v38  ;;  %v1573_v47 = vpop.f32.mrb[15].mxu0 }
 0x1a4   : > { %v3199_v48 = vpop.eup %3198  ;;  %2184 = vst [vmem:[%s4293_s8 + $0x20] sm:$0xff] %v2120_v39  ;;  %v2058_v50 = vadd.f32 1.0, %v3197_v42  ;;  %v1937_v51 = vmul.f32 0.70710677, %v4314_v40  ;;  %v2956_v52 = vadd.f32 %v1573_v47, %v801_v41 }
 0x1a5   : > { %2185 = vst [vmem:[%s4293_s8 + $0x28] sm:$0xff] %v2121_v44  ;;  %v2059_v54 = vadd.f32 1.0, %v3199_v48  ;;  %3208 = verf.f32 %v1936_v46  ;;  %v4323_v55 = vadd.f32 %v2955_v35, %v4258_v6  ;;  %v805_v56 = vpop.f32.mrb[16].mxu1  ;;  %v1872_v46 = vmul.f32 0.5, %v4311_v37 }
 0x1a6   : > { %v2122_v57 = vmul.f32 %v2058_v50, %v1866_v49  ;;  %3210 = verf.f32 %v1937_v51  ;;  %v4326_v58 = vadd.f32 %v2956_v52, %v4260_v7  ;;  %v1577_v43 = vpop.f32.mrb[16].mxu0  ;;  %v807_v60 = vpop.f32.mrb[17].mxu1  ;;  %v1873_v49 = vmul.f32 0.5, %v4314_v40 }
 0x1a7   : > { %v3201_v61 = vpop.eup %3200  ;;  %v2123_v63 = vmul.f32 %v2059_v54, %v1867_v53  ;;  %v1938_v2 = vmul.f32 0.70710677, %v4323_v55  ;;  %v2957_v45 = vadd.f32 %v1577_v43, %v805_v56  ;;  %v1579_v3 = vpop.f32.mrb[17].mxu0 }
 0x1a8   : > { %v3203_v4 = vpop.eup %3202  ;;  %2186 = vst [vmem:[%s4293_s8 + $0x30] sm:$0xff] %v2122_v57  ;;  %v2060_v8 = vadd.f32 1.0, %v3201_v61  ;;  %v1939_v9 = vmul.f32 0.70710677, %v4326_v58  ;;  %v2958_v10 = vadd.f32 %v1579_v3, %v807_v60 }
 0x1a9   : > { %2187 = vst [vmem:[%s4293_s8 + $0x38] sm:$0xff] %v2123_v63  ;;  %v2061_v12 = vadd.f32 1.0, %v3203_v4  ;;  %3212 = verf.f32 %v1938_v2  ;;  %v4335_v13 = vadd.f32 %v2957_v45, %v4258_v6  ;;  %v811_v14 = vpop.f32.mrb[18].mxu1  ;;  %v1874_v2 = vmul.f32 0.5, %v4323_v55 }
 0x1aa   : > { %v2124_v15 = vmul.f32 %v2060_v8, %v1868_v5  ;;  %3214 = verf.f32 %v1939_v9  ;;  %v4338_v16 = vadd.f32 %v2958_v10, %v4260_v7  ;;  %v1583_v59 = vpop.f32.mrb[18].mxu0  ;;  %v813_v18 = vpop.f32.mrb[19].mxu1  ;;  %v1875_v5 = vmul.f32 0.5, %v4326_v58 }
 0x1ab   : > { %v3205_v19 = vpop.eup %3204  ;;  %v2125_v21 = vmul.f32 %v2061_v12, %v1869_v11  ;;  %v1940_v22 = vmul.f32 0.70710677, %v4335_v13  ;;  %v2959_v62 = vadd.f32 %v1583_v59, %v811_v14  ;;  %v1585_v23 = vpop.f32.mrb[19].mxu0 }
 0x1ac   : > { %v3207_v24 = vpop.eup %3206  ;;  %2188 = vst [vmem:[%s4293_s8 + $0x40] sm:$0xff] %v2124_v15  ;;  %v2062_v25 = vadd.f32 1.0, %v3205_v19  ;;  %v1941_v27 = vmul.f32 0.70710677, %v4338_v16  ;;  %v2960_v28 = vadd.f32 %v1585_v23, %v813_v18 }
 0x1ad   : > { %2189 = vst [vmem:[%s4293_s8 + $0x48] sm:$0xff] %v2125_v21  ;;  %v2063_v30 = vadd.f32 1.0, %v3207_v24  ;;  %3216 = verf.f32 %v1940_v22  ;;  %v4347_v31 = vadd.f32 %v2959_v62, %v4258_v6  ;;  %v817_v32 = vpop.f32.mrb[20].mxu1  ;;  %v1876_v22 = vmul.f32 0.5, %v4335_v13 }
 0x1ae   : > { %v2126_v34 = vmul.f32 %v2062_v25, %v1870_v26  ;;  %3218 = verf.f32 %v1941_v27  ;;  %v4350_v36 = vadd.f32 %v2960_v28, %v4260_v7  ;;  %v1589_v17 = vpop.f32.mrb[20].mxu0  ;;  %v819_v38 = vpop.f32.mrb[21].mxu1  ;;  %v1877_v26 = vmul.f32 0.5, %v4338_v16 }
 0x1af   : > { %v3209_v39 = vpop.eup %3208  ;;  %v2127_v33 = vmul.f32 %v2063_v30, %v1871_v29  ;;  %v1942_v41 = vmul.f32 0.70710677, %v4347_v31  ;;  %v2961_v20 = vadd.f32 %v1589_v17, %v817_v32  ;;  %v1591_v42 = vpop.f32.mrb[21].mxu0 }
 0x1b0   : > { %v3211_v44 = vpop.eup %3210  ;;  %2190 = vst [vmem:[%s4293_s8 + $0x50] sm:$0xff] %v2126_v34  ;;  %v2064_v35 = vadd.f32 1.0, %v3209_v39  ;;  %v1943_v47 = vmul.f32 0.70710677, %v4350_v36  ;;  %v2962_v48 = vadd.f32 %v1591_v42, %v819_v38 }
 0x1b1   : > { %2191 = vst [vmem:[%s4293_s8 + $0x58] sm:$0xff] %v2127_v33  ;;  %v2065_v50 = vadd.f32 1.0, %v3211_v44  ;;  %3220 = verf.f32 %v1942_v41  ;;  %v4359_v51 = vadd.f32 %v2961_v20, %v4258_v6  ;;  %v823_v52 = vpop.f32.mrb[22].mxu1  ;;  %v1878_v41 = vmul.f32 0.5, %v4347_v31 }
 0x1b2   : > { %v2128_v53 = vmul.f32 %v2064_v35, %v1872_v46  ;;  %3222 = verf.f32 %v1943_v47  ;;  %v4362_v54 = vadd.f32 %v2962_v48, %v4260_v7  ;;  %v1595_v37 = vpop.f32.mrb[22].mxu0  ;;  %v825_v56 = vpop.f32.mrb[23].mxu1  ;;  %v1879_v46 = vmul.f32 0.5, %v4350_v36 }
 0x1b3   : > { %v3213_v57 = vpop.eup %3212  ;;  %v2129_v43 = vmul.f32 %v2065_v50, %v1873_v49  ;;  %v1944_v60 = vmul.f32 0.70710677, %v4359_v51  ;;  %v2963_v40 = vadd.f32 %v1595_v37, %v823_v52  ;;  %v1597_v61 = vpop.f32.mrb[23].mxu0 }
 0x1b4   : > { %v3215_v63 = vpop.eup %3214  ;;  %2192 = vst [vmem:[%s4293_s8 + $0x60] sm:$0xff] %v2128_v53  ;;  %v2066_v45 = vadd.f32 1.0, %v3213_v57  ;;  %v1945_v3 = vmul.f32 0.70710677, %v4362_v54  ;;  %v2964_v4 = vadd.f32 %v1597_v61, %v825_v56 }
 0x1b5   : > { %2193 = vst [vmem:[%s4293_s8 + $0x68] sm:$0xff] %v2129_v43  ;;  %v2067_v8 = vadd.f32 1.0, %v3215_v63  ;;  %3224 = verf.f32 %v1944_v60  ;;  %v4371_v9 = vadd.f32 %v2963_v40, %v4258_v6  ;;  %v829_v10 = vpop.f32.mrb[24].mxu1  ;;  %v1880_v60 = vmul.f32 0.5, %v4359_v51 }
 0x1b6   : > { %v2130_v11 = vmul.f32 %v2066_v45, %v1874_v2  ;;  %3226 = verf.f32 %v1945_v3  ;;  %v4374_v12 = vadd.f32 %v2964_v4, %v4260_v7  ;;  %v1601_v55 = vpop.f32.mrb[24].mxu0  ;;  %v831_v14 = vpop.f32.mrb[25].mxu1  ;;  %v1881_v2 = vmul.f32 0.5, %v4362_v54 }
 0x1b7   : > { %v3217_v15 = vpop.eup %3216  ;;  %v2131_v59 = vmul.f32 %v2067_v8, %v1875_v5  ;;  %v1946_v18 = vmul.f32 0.70710677, %v4371_v9  ;;  %v2965_v58 = vadd.f32 %v1601_v55, %v829_v10  ;;  %v1603_v19 = vpop.f32.mrb[25].mxu0 }
 0x1b8   : > { %v3219_v21 = vpop.eup %3218  ;;  %2194 = vst [vmem:[%s4293_s8 + $0x70] sm:$0xff] %v2130_v11  ;;  %v2068_v62 = vadd.f32 1.0, %v3217_v15  ;;  %v1947_v23 = vmul.f32 0.70710677, %v4374_v12  ;;  %v2966_v24 = vadd.f32 %v1603_v19, %v831_v14 }
 0x1b9   : > { %2195 = vst [vmem:[%s4293_s8 + $0x78] sm:$0xff] %v2131_v59  ;;  %v2069_v25 = vadd.f32 1.0, %v3219_v21  ;;  %3228 = verf.f32 %v1946_v18  ;;  %v4383_v27 = vadd.f32 %v2965_v58, %v4258_v6  ;;  %v835_v28 = vpop.f32.mrb[26].mxu1  ;;  %v1882_v18 = vmul.f32 0.5, %v4371_v9 }
 0x1ba   : > { %v2132_v29 = vmul.f32 %v2068_v62, %v1876_v22  ;;  %3230 = verf.f32 %v1947_v23  ;;  %v4386_v30 = vadd.f32 %v2966_v24, %v4260_v7  ;;  %v1607_v13 = vpop.f32.mrb[26].mxu0  ;;  %v837_v32 = vpop.f32.mrb[27].mxu1  ;;  %v1883_v22 = vmul.f32 0.5, %v4374_v12 }
 0x1bb   : > { %v3221_v34 = vpop.eup %3220  ;;  %v2133_v17 = vmul.f32 %v2069_v25, %v1877_v26  ;;  %v1948_v38 = vmul.f32 0.70710677, %v4383_v27  ;;  %v2967_v16 = vadd.f32 %v1607_v13, %v835_v28  ;;  %v1609_v39 = vpop.f32.mrb[27].mxu0 }
 0x1bc   : > { %v3223_v33 = vpop.eup %3222  ;;  %2196 = vst [vmem:[%s4293_s8 + $0x80] sm:$0xff] %v2132_v29  ;;  %v2070_v20 = vadd.f32 1.0, %v3221_v34  ;;  %v1949_v42 = vmul.f32 0.70710677, %v4386_v30  ;;  %v2968_v44 = vadd.f32 %v1609_v39, %v837_v32 }
 0x1bd   : > { %2197 = vst [vmem:[%s4293_s8 + $0x88] sm:$0xff] %v2133_v17  ;;  %v2071_v35 = vadd.f32 1.0, %v3223_v33  ;;  %3232 = verf.f32 %v1948_v38  ;;  %v4395_v47 = vadd.f32 %v2967_v16, %v4258_v6  ;;  %v841_v48 = vpop.f32.mrb[28].mxu1  ;;  %v1884_v38 = vmul.f32 0.5, %v4383_v27 }
 0x1be   : > { %v2134_v49 = vmul.f32 %v2070_v20, %v1878_v41  ;;  %3234 = verf.f32 %v1949_v42  ;;  %v4398_v50 = vadd.f32 %v2968_v44, %v4260_v7  ;;  %v1613_v31 = vpop.f32.mrb[28].mxu0  ;;  %v843_v52 = vpop.f32.mrb[29].mxu1  ;;  %v1885_v41 = vmul.f32 0.5, %v4386_v30 }
 0x1bf   : > { %v3225_v53 = vpop.eup %3224  ;;  %v2135_v37 = vmul.f32 %v2071_v35, %v1879_v46  ;;  %v1950_v56 = vmul.f32 0.70710677, %v4395_v47  ;;  %v2969_v36 = vadd.f32 %v1613_v31, %v841_v48  ;;  %v1615_v57 = vpop.f32.mrb[29].mxu0 }
 0x1c0   : > { %v3227_v43 = vpop.eup %3226  ;;  %2198 = vst [vmem:[%s4293_s8 + $0x90] sm:$0xff] %v2134_v49  ;;  %v2072_v40 = vadd.f32 1.0, %v3225_v53  ;;  %v1951_v61 = vmul.f32 0.70710677, %v4398_v50  ;;  %v2970_v63 = vadd.f32 %v1615_v57, %v843_v52 }
 0x1c1   : > { %2199 = vst [vmem:[%s4293_s8 + $0x98] sm:$0xff] %v2135_v37  ;;  %v2073_v45 = vadd.f32 1.0, %v3227_v43  ;;  %3236 = verf.f32 %v1950_v56  ;;  %v4407_v3 = vadd.f32 %v2969_v36, %v4258_v6  ;;  %v847_v4 = vpop.f32.mrb[30].mxu1  ;;  %v1886_v56 = vmul.f32 0.5, %v4395_v47 }
 0x1c2   : > { %v2136_v5 = vmul.f32 %v2072_v40, %v1880_v60  ;;  %3238 = verf.f32 %v1951_v61  ;;  %v4410_v8 = vadd.f32 %v2970_v63, %v4260_v7  ;;  %v1619_v51 = vpop.f32.mrb[30].mxu0  ;;  %v849_v10 = vpop.f32.mrb[31].mxu1  ;;  %v1887_v60 = vmul.f32 0.5, %v4398_v50 }
 0x1c3   : > { %v3229_v11 = vpop.eup %3228  ;;  %v2137_v55 = vmul.f32 %v2073_v45, %v1881_v2  ;;  %v1952_v14 = vmul.f32 0.70710677, %v4407_v3  ;;  %v2971_v54 = vadd.f32 %v1619_v51, %v847_v4  ;;  %v1621_v15 = vpop.f32.mrb[31].mxu0 }
 0x1c4   : > { %v3231_v59 = vpop.eup %3230  ;;  %2200 = vst [vmem:[%s4293_s8 + $0xa0] sm:$0xff] %v2136_v5  ;;  %v2074_v58 = vadd.f32 1.0, %v3229_v11  ;;  %v1953_v19 = vmul.f32 0.70710677, %v4410_v8  ;;  %v2972_v21 = vadd.f32 %v1621_v15, %v849_v10 }
 0x1c5   : > { %2201 = vst [vmem:[%s4293_s8 + $0xa8] sm:$0xff] %v2137_v55  ;;  %v2075_v62 = vadd.f32 1.0, %v3231_v59  ;;  %3240 = verf.f32 %v1952_v14  ;;  %v4419_v23 = vadd.f32 %v2971_v54, %v4258_v6  ;;  %v853_v24 = vpop.f32.mrb[32].mxu1  ;;  %v1888_v14 = vmul.f32 0.5, %v4407_v3 }
 0x1c6   : > { %v2138_v26 = vmul.f32 %v2074_v58, %v1882_v18  ;;  %3242 = verf.f32 %v1953_v19  ;;  %v4422_v25 = vadd.f32 %v2972_v21, %v4260_v7  ;;  %v1625_v9 = vpop.f32.mrb[32].mxu0  ;;  %v855_v28 = vpop.f32.mrb[33].mxu1  ;;  %v1889_v18 = vmul.f32 0.5, %v4410_v8 }
 0x1c7   : > { %v3233_v29 = vpop.eup %3232  ;;  %v2139_v13 = vmul.f32 %v2075_v62, %v1883_v22  ;;  %v1954_v32 = vmul.f32 0.70710677, %v4419_v23  ;;  %v2973_v12 = vadd.f32 %v1625_v9, %v853_v24  ;;  %v1627_v34 = vpop.f32.mrb[33].mxu0 }
 0x1c8   : > { %v3235_v17 = vpop.eup %3234  ;;  %2202 = vst [vmem:[%s4293_s8 + $0xb0] sm:$0xff] %v2138_v26  ;;  %v2076_v16 = vadd.f32 1.0, %v3233_v29  ;;  %v1955_v39 = vmul.f32 0.70710677, %v4422_v25  ;;  %v2974_v33 = vadd.f32 %v1627_v34, %v855_v28 }
 0x1c9   : > { %2203 = vst [vmem:[%s4293_s8 + $0xb8] sm:$0xff] %v2139_v13  ;;  %v2077_v20 = vadd.f32 1.0, %v3235_v17  ;;  %3244 = verf.f32 %v1954_v32  ;;  %v4431_v42 = vadd.f32 %v2973_v12, %v4258_v6  ;;  %v859_v44 = vpop.f32.mrb[34].mxu1  ;;  %v1890_v32 = vmul.f32 0.5, %v4419_v23 }
 0x1ca   : > { %v2140_v46 = vmul.f32 %v2076_v16, %v1884_v38  ;;  %3246 = verf.f32 %v1955_v39  ;;  %v4434_v35 = vadd.f32 %v2974_v33, %v4260_v7  ;;  %v1631_v27 = vpop.f32.mrb[34].mxu0  ;;  %v861_v48 = vpop.f32.mrb[35].mxu1  ;;  %v1891_v38 = vmul.f32 0.5, %v4422_v25 }
 0x1cb   : > { %v3237_v49 = vpop.eup %3236  ;;  %v2141_v31 = vmul.f32 %v2077_v20, %v1885_v41  ;;  %v1956_v52 = vmul.f32 0.70710677, %v4431_v42  ;;  %v2975_v30 = vadd.f32 %v1631_v27, %v859_v44  ;;  %v1633_v53 = vpop.f32.mrb[35].mxu0 }
 0x1cc   : > { %v3239_v37 = vpop.eup %3238  ;;  %2204 = vst [vmem:[%s4293_s8 + $0xc0] sm:$0xff] %v2140_v46  ;;  %v2078_v36 = vadd.f32 1.0, %v3237_v49  ;;  %v1957_v57 = vmul.f32 0.70710677, %v4434_v35  ;;  %v2976_v43 = vadd.f32 %v1633_v53, %v861_v48 }
 0x1cd   : > { %2205 = vst [vmem:[%s4293_s8 + $0xc8] sm:$0xff] %v2141_v31  ;;  %v2079_v40 = vadd.f32 1.0, %v3239_v37  ;;  %3248 = verf.f32 %v1956_v52  ;;  %v4443_v61 = vadd.f32 %v2975_v30, %v4258_v6  ;;  %v865_v63 = vpop.f32.mrb[36].mxu1  ;;  %v1892_v52 = vmul.f32 0.5, %v4431_v42 }
 0x1ce   : > { %v2142_v2 = vmul.f32 %v2078_v36, %v1886_v56  ;;  %3250 = verf.f32 %v1957_v57  ;;  %v4446_v45 = vadd.f32 %v2976_v43, %v4260_v7  ;;  %v1637_v47 = vpop.f32.mrb[36].mxu0  ;;  %v867_v4 = vpop.f32.mrb[37].mxu1  ;;  %v1893_v56 = vmul.f32 0.5, %v4434_v35 }
 0x1cf   : > { %v3241_v5 = vpop.eup %3240  ;;  %v2143_v51 = vmul.f32 %v2079_v40, %v1887_v60  ;;  %v1958_v10 = vmul.f32 0.70710677, %v4443_v61  ;;  %v2977_v50 = vadd.f32 %v1637_v47, %v865_v63  ;;  %v1639_v11 = vpop.f32.mrb[37].mxu0 }
 0x1d0   : > { %v3243_v55 = vpop.eup %3242  ;;  %2206 = vst [vmem:[%s4293_s8 + $0xd0] sm:$0xff] %v2142_v2  ;;  %v2080_v54 = vadd.f32 1.0, %v3241_v5  ;;  %v1959_v15 = vmul.f32 0.70710677, %v4446_v45  ;;  %v2978_v59 = vadd.f32 %v1639_v11, %v867_v4 }
 0x1d1   : > { %2207 = vst [vmem:[%s4293_s8 + $0xd8] sm:$0xff] %v2143_v51  ;;  %v2081_v58 = vadd.f32 1.0, %v3243_v55  ;;  %3252 = verf.f32 %v1958_v10  ;;  %v4455_v19 = vadd.f32 %v2977_v50, %v4258_v6  ;;  %v871_v21 = vpop.f32.mrb[38].mxu1  ;;  %v1894_v10 = vmul.f32 0.5, %v4443_v61 }
 0x1d2   : > { %v2144_v22 = vmul.f32 %v2080_v54, %v1888_v14  ;;  %3254 = verf.f32 %v1959_v15  ;;  %v4458_v62 = vadd.f32 %v2978_v59, %v4260_v7  ;;  %v1643_v3 = vpop.f32.mrb[38].mxu0  ;;  %v873_v24 = vpop.f32.mrb[39].mxu1  ;;  %v1895_v14 = vmul.f32 0.5, %v4446_v45 }
 0x1d3   : > { %v3245_v26 = vpop.eup %3244  ;;  %v2145_v9 = vmul.f32 %v2081_v58, %v1889_v18  ;;  %v1960_v28 = vmul.f32 0.70710677, %v4455_v19  ;;  %v2979_v8 = vadd.f32 %v1643_v3, %v871_v21  ;;  %v1645_v29 = vpop.f32.mrb[39].mxu0 }
 0x1d4   : > { %v3247_v13 = vpop.eup %3246  ;;  %2208 = vst [vmem:[%s4293_s8 + $0xe0] sm:$0xff] %v2144_v22  ;;  %v2082_v12 = vadd.f32 1.0, %v3245_v26  ;;  %v1961_v34 = vmul.f32 0.70710677, %v4458_v62  ;;  %v2980_v17 = vadd.f32 %v1645_v29, %v873_v24 }
 0x1d5   : > { %2209 = vst [vmem:[%s4293_s8 + $0xe8] sm:$0xff] %v2145_v9  ;;  %v2083_v16 = vadd.f32 1.0, %v3247_v13  ;;  %3256 = verf.f32 %v1960_v28  ;;  %v4467_v39 = vadd.f32 %v2979_v8, %v4258_v6  ;;  %v877_v33 = vpop.f32.mrb[40].mxu1  ;;  %v1896_v28 = vmul.f32 0.5, %v4455_v19 }
 0x1d6   : > { %v2146_v41 = vmul.f32 %v2082_v12, %v1890_v32  ;;  %3258 = verf.f32 %v1961_v34  ;;  %v4470_v20 = vadd.f32 %v2980_v17, %v4260_v7  ;;  %v1649_v23 = vpop.f32.mrb[40].mxu0  ;;  %v879_v44 = vpop.f32.mrb[41].mxu1  ;;  %v1897_v32 = vmul.f32 0.5, %v4458_v62 }
 0x1d7   : > { %v3249_v46 = vpop.eup %3248  ;;  %v2147_v27 = vmul.f32 %v2083_v16, %v1891_v38  ;;  %v1962_v48 = vmul.f32 0.70710677, %v4467_v39  ;;  %v2981_v25 = vadd.f32 %v1649_v23, %v877_v33  ;;  %v1651_v49 = vpop.f32.mrb[41].mxu0 }
 0x1d8   : > { %v3251_v31 = vpop.eup %3250  ;;  %2210 = vst [vmem:[%s4293_s8 + $0xf0] sm:$0xff] %v2146_v41  ;;  %v2084_v30 = vadd.f32 1.0, %v3249_v46  ;;  %v1963_v53 = vmul.f32 0.70710677, %v4470_v20  ;;  %v2982_v37 = vadd.f32 %v1651_v49, %v879_v44 }
 0x1d9   : > { %2211 = vst [vmem:[%s4293_s8 + $0xf8] sm:$0xff] %v2147_v27  ;;  %v2085_v36 = vadd.f32 1.0, %v3251_v31  ;;  %3260 = verf.f32 %v1962_v48  ;;  %v4479_v57 = vadd.f32 %v2981_v25, %v4258_v6  ;;  %v883_v43 = vpop.f32.mrb[42].mxu1  ;;  %v1898_v48 = vmul.f32 0.5, %v4467_v39 }
 0x1da   : > { %v2148_v60 = vmul.f32 %v2084_v30, %v1892_v52  ;;  %3262 = verf.f32 %v1963_v53  ;;  %v4482_v40 = vadd.f32 %v2982_v37, %v4260_v7  ;;  %v1655_v42 = vpop.f32.mrb[42].mxu0  ;;  %v885_v63 = vpop.f32.mrb[43].mxu1  ;;  %v1899_v52 = vmul.f32 0.5, %v4470_v20 }
 0x1db   : > { %v3253_v2 = vpop.eup %3252  ;;  %v2149_v47 = vmul.f32 %v2085_v36, %v1893_v56  ;;  %v1964_v4 = vmul.f32 0.70710677, %v4479_v57  ;;  %v2983_v35 = vadd.f32 %v1655_v42, %v883_v43  ;;  %v1657_v5 = vpop.f32.mrb[43].mxu0 }
 0x1dc   : > { %v3255_v51 = vpop.eup %3254  ;;  %2212 = vst [vmem:[%s4293_s8 + $0x100] sm:$0xff] %v2148_v60  ;;  %v2086_v50 = vadd.f32 1.0, %v3253_v2  ;;  %v1965_v11 = vmul.f32 0.70710677, %v4482_v40  ;;  %v2984_v55 = vadd.f32 %v1657_v5, %v885_v63 }
 0x1dd   : > { %2213 = vst [vmem:[%s4293_s8 + $0x108] sm:$0xff] %v2149_v47  ;;  %v2087_v54 = vadd.f32 1.0, %v3255_v51  ;;  %3264 = verf.f32 %v1964_v4  ;;  %v4491_v15 = vadd.f32 %v2983_v35, %v4258_v6  ;;  %v889_v59 = vpop.f32.mrb[44].mxu1  ;;  %v1900_v4 = vmul.f32 0.5, %v4479_v57 }
 0x1de   : > { %v2150_v18 = vmul.f32 %v2086_v50, %v1894_v10  ;;  %3266 = verf.f32 %v1965_v11  ;;  %v4494_v58 = vadd.f32 %v2984_v55, %v4260_v7  ;;  %v1661_v61 = vpop.f32.mrb[44].mxu0  ;;  %v891_v21 = vpop.f32.mrb[45].mxu1  ;;  %v1901_v10 = vmul.f32 0.5, %v4482_v40 }
 0x1df   : > { %v3257_v22 = vpop.eup %3256  ;;  %v2151_v3 = vmul.f32 %v2087_v54, %v1895_v14  ;;  %v1966_v24 = vmul.f32 0.70710677, %v4491_v15  ;;  %v2985_v45 = vadd.f32 %v1661_v61, %v889_v59  ;;  %v1663_v26 = vpop.f32.mrb[45].mxu0 }
 0x1e0   : > { %v3259_v9 = vpop.eup %3258  ;;  %2214 = vst [vmem:[%s4293_s8 + $0x110] sm:$0xff] %v2150_v18  ;;  %v2088_v8 = vadd.f32 1.0, %v3257_v22  ;;  %v1967_v29 = vmul.f32 0.70710677, %v4494_v58  ;;  %v2986_v13 = vadd.f32 %v1663_v26, %v891_v21 }
 0x1e1   : > { %2215 = vst [vmem:[%s4293_s8 + $0x118] sm:$0xff] %v2151_v3  ;;  %v2089_v12 = vadd.f32 1.0, %v3259_v9  ;;  %3268 = verf.f32 %v1966_v24  ;;  %v4503_v34 = vadd.f32 %v2985_v45, %v4258_v6  ;;  %v895_v17 = vpop.f32.mrb[46].mxu1  ;;  %v1902_v24 = vmul.f32 0.5, %v4491_v15 }
 0x1e2   : > { %v2152_v38 = vmul.f32 %v2088_v8, %v1896_v28  ;;  %3270 = verf.f32 %v1967_v29  ;;  %v4506_v16 = vadd.f32 %v2986_v13, %v4260_v7  ;;  %v1667_v19 = vpop.f32.mrb[46].mxu0  ;;  %v897_v33 = vpop.f32.mrb[47].mxu1  ;;  %v1903_v28 = vmul.f32 0.5, %v4494_v58 }
 0x1e3   : > { %v3261_v41 = vpop.eup %3260  ;;  %v2153_v23 = vmul.f32 %v2089_v12, %v1897_v32  ;;  %v1968_v44 = vmul.f32 0.70710677, %v4503_v34  ;;  %v2987_v62 = vadd.f32 %v1667_v19, %v895_v17  ;;  %v1669_v46 = vpop.f32.mrb[47].mxu0 }
 0x1e4   : > { %v3263_v27 = vpop.eup %3262  ;;  %2216 = vst [vmem:[%s4293_s8 + $0x120] sm:$0xff] %v2152_v38  ;;  %v2090_v25 = vadd.f32 1.0, %v3261_v41  ;;  %v1969_v49 = vmul.f32 0.70710677, %v4506_v16  ;;  %v2988_v31 = vadd.f32 %v1669_v46, %v897_v33 }
 0x1e5   : > { %2217 = vst [vmem:[%s4293_s8 + $0x128] sm:$0xff] %v2153_v23  ;;  %v2091_v30 = vadd.f32 1.0, %v3263_v27  ;;  %3272 = verf.f32 %v1968_v44  ;;  %v4515_v53 = vadd.f32 %v2987_v62, %v4258_v6  ;;  %v901_v37 = vpop.f32.mrb[48].mxu1  ;;  %v1904_v44 = vmul.f32 0.5, %v4503_v34 }
 0x1e6   : > { %v2154_v56 = vmul.f32 %v2090_v25, %v1898_v48  ;;  %3274 = verf.f32 %v1969_v49  ;;  %v4518_v36 = vadd.f32 %v2988_v31, %v4260_v7  ;;  %v1673_v39 = vpop.f32.mrb[48].mxu0  ;;  %v903_v43 = vpop.f32.mrb[49].mxu1  ;;  %v1905_v48 = vmul.f32 0.5, %v4506_v16 }
 0x1e7   : > { %v3265_v60 = vpop.eup %3264  ;;  %v2155_v42 = vmul.f32 %v2091_v30, %v1899_v52  ;;  %v1970_v63 = vmul.f32 0.70710677, %v4515_v53  ;;  %v2989_v20 = vadd.f32 %v1673_v39, %v901_v37  ;;  %v1675_v2 = vpop.f32.mrb[49].mxu0 }
 0x1e8   : > { %v3267_v47 = vpop.eup %3266  ;;  %2218 = vst [vmem:[%s4293_s8 + $0x130] sm:$0xff] %v2154_v56  ;;  %v2092_v35 = vadd.f32 1.0, %v3265_v60  ;;  %v1971_v5 = vmul.f32 0.70710677, %v4518_v36  ;;  %v2990_v51 = vadd.f32 %v1675_v2, %v903_v43 }
 0x1e9   : > { %2219 = vst [vmem:[%s4293_s8 + $0x138] sm:$0xff] %v2155_v42  ;;  %v2093_v50 = vadd.f32 1.0, %v3267_v47  ;;  %3276 = verf.f32 %v1970_v63  ;;  %v4527_v11 = vadd.f32 %v2989_v20, %v4258_v6  ;;  %v907_v55 = vpop.f32.mrb[50].mxu1  ;;  %v1906_v63 = vmul.f32 0.5, %v4515_v53 }
 0x1ea   : > { %v2156_v14 = vmul.f32 %v2092_v35, %v1900_v4  ;;  %3278 = verf.f32 %v1971_v5  ;;  %v4530_v54 = vadd.f32 %v2990_v51, %v4260_v7  ;;  %v1679_v57 = vpop.f32.mrb[50].mxu0  ;;  %v909_v59 = vpop.f32.mrb[51].mxu1  ;;  %v1907_v4 = vmul.f32 0.5, %v4518_v36 }
 0x1eb   : > { %v3269_v18 = vpop.eup %3268  ;;  %v2157_v61 = vmul.f32 %v2093_v50, %v1901_v10  ;;  %v1972_v21 = vmul.f32 0.70710677, %v4527_v11  ;;  %v2991_v40 = vadd.f32 %v1679_v57, %v907_v55  ;;  %v1681_v22 = vpop.f32.mrb[51].mxu0 }
 0x1ec   : > { %v3271_v3 = vpop.eup %3270  ;;  %2220 = vst [vmem:[%s4293_s8 + $0x140] sm:$0xff] %v2156_v14  ;;  %v2094_v45 = vadd.f32 1.0, %v3269_v18  ;;  %v1973_v26 = vmul.f32 0.70710677, %v4530_v54  ;;  %v2992_v9 = vadd.f32 %v1681_v22, %v909_v59 }
 0x1ed   : > { %2221 = vst [vmem:[%s4293_s8 + $0x148] sm:$0xff] %v2157_v61  ;;  %v2095_v8 = vadd.f32 1.0, %v3271_v3  ;;  %3280 = verf.f32 %v1972_v21  ;;  %v4539_v29 = vadd.f32 %v2991_v40, %v4258_v6  ;;  %v913_v13 = vpop.f32.mrb[52].mxu1  ;;  %v1908_v21 = vmul.f32 0.5, %v4527_v11 }
 0x1ee   : > { %v2158_v32 = vmul.f32 %v2094_v45, %v1902_v24  ;;  %3282 = verf.f32 %v1973_v26  ;;  %v4542_v12 = vadd.f32 %v2992_v9, %v4260_v7  ;;  %v1685_v15 = vpop.f32.mrb[52].mxu0  ;;  %v915_v17 = vpop.f32.mrb[53].mxu1  ;;  %v1909_v24 = vmul.f32 0.5, %v4530_v54 }
 0x1ef   : > { %v3273_v38 = vpop.eup %3272  ;;  %v2159_v19 = vmul.f32 %v2095_v8, %v1903_v28  ;;  %v1974_v33 = vmul.f32 0.70710677, %v4539_v29  ;;  %v2993_v58 = vadd.f32 %v1685_v15, %v913_v13  ;;  %v1687_v41 = vpop.f32.mrb[53].mxu0 }
 0x1f0   : > { %v3275_v23 = vpop.eup %3274  ;;  %2222 = vst [vmem:[%s4293_s8 + $0x150] sm:$0xff] %v2158_v32  ;;  %v2096_v62 = vadd.f32 1.0, %v3273_v38  ;;  %v1975_v46 = vmul.f32 0.70710677, %v4542_v12  ;;  %v2994_v27 = vadd.f32 %v1687_v41, %v915_v17  ;;  %v1910_v41 = vmul.f32 0.5, %v4539_v29 }
 0x1f1   : > { %2223 = vst [vmem:[%s4293_s8 + $0x158] sm:$0xff] %v2159_v19  ;;  %v2097_v25 = vadd.f32 1.0, %v3275_v23  ;;  %3284 = verf.f32 %v1974_v33  ;;  %v4551_v49 = vadd.f32 %v2993_v58, %v4258_v6  ;;  %v919_v31 = vpop.f32.mrb[54].mxu1  ;;  %v3409_v19 = vmov 1966171168  }
 0x1f2   : > { %v2160_v52 = vmul.f32 %v2096_v62, %v1904_v44  ;;  %3286 = verf.f32 %v1975_v46  ;;  %v4554_v30 = vadd.f32 %v2994_v27, %v4260_v7  ;;  %v1691_v34 = vpop.f32.mrb[54].mxu0  ;;  %v921_v37 = vpop.f32.mrb[55].mxu1  ;;  %v2369_v33 = vunpack.c.l.s4 %v3409_v19 }
 0x1f3   : > { %v3277_v56 = vpop.eup %3276  ;;  %v2161_v39 = vmul.f32 %v2097_v25, %v1905_v48  ;;  %v1976_v43 = vmul.f32 0.70710677, %v4551_v49  ;;  %v2995_v16 = vadd.f32 %v1691_v34, %v919_v31  ;;  %v1693_v60 = vpop.f32.mrb[55].mxu0  ;;  %v1911_v46 = vmul.f32 0.5, %v4542_v12 }
 0x1f4   : > { %v3279_v42 = vpop.eup %3278  ;;  %2224 = vst [vmem:[%s4293_s8 + $0x160] sm:$0xff] %v2160_v52  ;;  %v2098_v20 = vadd.f32 1.0, %v3277_v56  ;;  %v1977_v2 = vmul.f32 0.70710677, %v4554_v30  ;;  %v2996_v47 = vadd.f32 %v1693_v60, %v921_v37 }
 0x1f5   : > { %2225 = vst [vmem:[%s4293_s8 + $0x168] sm:$0xff] %v2161_v39  ;;  %v2099_v35 = vadd.f32 1.0, %v3279_v42  ;;  %3288 = verf.f32 %v1976_v43  ;;  %v4563_v5 = vadd.f32 %v2995_v16, %v4258_v6  ;;  %v925_v51 = vpop.f32.mrb[56].mxu1  ;;  %v2370_v16 = vunpack.c.0.s8 %v2369_v33 }
 0x1f6   : > { %v2162_v10 = vmul.f32 %v2098_v20, %v1906_v63  ;;  %3290 = verf.f32 %v1977_v2  ;;  %v4566_v50 = vadd.f32 %v2996_v47, %v4260_v7  ;;  %v1697_v53 = vpop.f32.mrb[56].mxu0  ;;  %v927_v55 = vpop.f32.mrb[57].mxu1  ;;  %v1912_v42 = vmul.f32 0.5, %v4551_v49 }
 0x1f7   : > { %v3281_v14 = vpop.eup %3280  ;;  %v2163_v57 = vmul.f32 %v2099_v35, %v1907_v4  ;;  %v1978_v59 = vmul.f32 0.70710677, %v4563_v5  ;;  %v2997_v36 = vadd.f32 %v1697_v53, %v925_v51  ;;  %v1699_v18 = vpop.f32.mrb[57].mxu0  ;;  %v1913_v47 = vmul.f32 0.5, %v4554_v30 }
 0x1f8   : > { %v3283_v61 = vpop.eup %3282  ;;  %2226 = vst [vmem:[%s4293_s8 + $0x170] sm:$0xff] %v2162_v10  ;;  %v2100_v40 = vadd.f32 1.0, %v3281_v14  ;;  %v1979_v22 = vmul.f32 0.70710677, %v4566_v50  ;;  %v2998_v3 = vadd.f32 %v1699_v18, %v927_v55  ;;  %v2373_v18 = vsub.s32 %v2370_v16, %v4251_v1 }
 0x1f9   : > { %2227 = vst [vmem:[%s4293_s8 + $0x178] sm:$0xff] %v2163_v57  ;;  %v2101_v45 = vadd.f32 1.0, %v3283_v61  ;;  %3292 = verf.f32 %v1978_v59  ;;  %v4575_v26 = vadd.f32 %v2997_v36, %v4258_v6  ;;  %v931_v9 = vpop.f32.mrb[58].mxu1 }
 0x1fa   : > { %v2164_v28 = vmul.f32 %v2100_v40, %v1908_v21  ;;  %3294 = verf.f32 %v1979_v22  ;;  %v4578_v8 = vadd.f32 %v2998_v3, %v4260_v7  ;;  %v1703_v11 = vpop.f32.mrb[58].mxu0  ;;  %v933_v13 = vpop.f32.mrb[59].mxu1  ;;  %v1914_v21 = vmul.f32 0.5, %v4563_v5 }
 0x1fb   : > { %v3285_v32 = vpop.eup %3284  ;;  %v2165_v15 = vmul.f32 %v2101_v45, %v1909_v24  ;;  %v1980_v17 = vmul.f32 0.70710677, %v4575_v26  ;;  %v2999_v54 = vadd.f32 %v1703_v11, %v931_v9  ;;  %v1705_v38 = vpop.f32.mrb[59].mxu0  ;;  %v1915_v24 = vmul.f32 0.5, %v4566_v50 }
 0x1fc   : > { %v3287_v58 = vpop.eup %3286  ;;  %2228 = vst [vmem:[%s4293_s8 + $0x180] sm:$0xff] %v2164_v28  ;;  %v2102_v23 = vadd.f32 1.0, %v3285_v32  ;;  %v1981_v44 = vmul.f32 0.70710677, %v4578_v8  ;;  %v3000_v62 = vadd.f32 %v1705_v38, %v933_v13 }
 0x1fd   : > { %2229 = vst [vmem:[%s4293_s8 + $0x188] sm:$0xff] %v2165_v15  ;;  %v2103_v27 = vadd.f32 1.0, %v3287_v58  ;;  %3296 = verf.f32 %v1980_v17  ;;  %v4587_v48 = vadd.f32 %v2999_v54, %v4258_v6  ;;  %v937_v25 = vpop.f32.mrb[60].mxu1 }
 0x1fe   : > { %v2166_v31 = vmul.f32 %v2102_v23, %v1910_v41  ;;  %3298 = verf.f32 %v1981_v44  ;;  %v4590_v52 = vadd.f32 %v3000_v62, %v4260_v7  ;;  %v1709_v29 = vpop.f32.mrb[60].mxu0  ;;  %v939_v34 = vpop.f32.mrb[61].mxu1 }
 0x1ff   : > { %v3289_v37 = vpop.eup %3288  ;;  %v2167_v56 = vmul.f32 %v2103_v27, %v1911_v46  ;;  %v1982_v39 = vmul.f32 0.70710677, %v4587_v48  ;;  %v3001_v12 = vadd.f32 %v1709_v29, %v937_v25  ;;  %v1711_v43 = vpop.f32.mrb[61].mxu0 }
 0x200   : > { %v3291_v60 = vpop.eup %3290  ;;  %2230 = vst [vmem:[%s4293_s8 + $0x190] sm:$0xff] %v2166_v31  ;;  %v2104_v63 = vadd.f32 1.0, %v3289_v37  ;;  %v1983_v20 = vmul.f32 0.70710677, %v4590_v52  ;;  %v3002_v2 = vadd.f32 %v1711_v43, %v939_v34  ;;  %v1919_v25 = vmul.f32 0.5, %v4590_v52 }
 0x201   : > { %2231 = vst [vmem:[%s4293_s8 + $0x198] sm:$0xff] %v2167_v56  ;;  %v2105_v4 = vadd.f32 1.0, %v3291_v60  ;;  %3300 = verf.f32 %v1982_v39  ;;  %v4599_v35 = vadd.f32 %v3001_v12, %v4258_v6  ;;  %v943_v51 = vpop.f32.mrb[62].mxu1 }
 0x202   : > { %v2168_v10 = vmul.f32 %v2104_v63, %v1912_v42  ;;  %3302 = verf.f32 %v1983_v20  ;;  %v4602_v53 = vadd.f32 %v3002_v2, %v4260_v7  ;;  %v1715_v49 = vpop.f32.mrb[62].mxu0  ;;  %v945_v55 = vpop.f32.mrb[63].mxu1 }
 0x203   : > { %v3293_v14 = vpop.eup %3292  ;;  %v2169_v57 = vmul.f32 %v2105_v4, %v1913_v47  ;;  %v1984_v59 = vmul.f32 0.70710677, %v4599_v35  ;;  %v3003_v30 = vadd.f32 %v1715_v49, %v943_v51  ;;  %v1717_v36 = vpop.f32.mrb[63].mxu0  ;;  %v1920_v39 = vmul.f32 0.5, %v4599_v35 }
 0x204   : > { %v3295_v61 = vpop.eup %3294  ;;  %2232 = vst [vmem:[%s4293_s8 + $0x1a0] sm:$0xff] %v2168_v10  ;;  %v2106_v40 = vadd.f32 1.0, %v3293_v14  ;;  %v1985_v22 = vmul.f32 0.70710677, %v4602_v53  ;;  %v3004_v3 = vadd.f32 %v1717_v36, %v945_v55  ;;  %v1921_v43 = vmul.f32 0.5, %v4602_v53 }
 0x205   : > { %2233 = vst [vmem:[%s4293_s8 + $0x1a8] sm:$0xff] %v2169_v57  ;;  %v2107_v45 = vadd.f32 1.0, %v3295_v61  ;;  %3304 = verf.f32 %v1984_v59  ;;  %v4612_v9 = vadd.f32 %v3003_v30, %v4258_v6  ;;  %v2360_v1 = vpop.f32.mrb[64].mxu1  ;;  %v1916_v6 = vmul.f32 0.5, %v4575_v26 }
 0x206   : > { %v2170_v28 = vmul.f32 %v2106_v40, %v1914_v21  ;;  %3306 = verf.f32 %v1985_v22  ;;  %v4615_v5 = vadd.f32 %v3004_v3, %v4260_v7  ;;  %v2362_v11 = vpop.f32.mrb[65].mxu1  ;;  %v1917_v7 = vmul.f32 0.5, %v4578_v8 }
 0x207   : > { %v3297_v13 = vpop.eup %3296  ;;  %v2171_v32 = vmul.f32 %v2107_v45, %v1915_v24  ;;  %v1986_v15 = vmul.f32 0.70710677, %v4612_v9  ;;  %v2367_v17 = vcombine.low %v2360_v1, %v2362_v11  ;;  %v1918_v8 = vmul.f32 0.5, %v4587_v48 }
 0x208   : > { %v3299_v50 = vpop.eup %3298  ;;  %2234 = vst [vmem:[%s4293_s8 + $0x1b0] sm:$0xff] %v2170_v28  ;;  %v2108_v54 = vadd.f32 1.0, %v3297_v13  ;;  %v1987_v38 = vmul.f32 0.70710677, %v4615_v5 }
 0x209   : > { %2235 = vst [vmem:[%s4293_s8 + $0x1b8] sm:$0xff] %v2171_v32  ;;  %v2109_v19 = vadd.f32 1.0, %v3299_v50  ;;  %3308 = verf.f32 %v1986_v15  ;;  %v2374_v33 = vrot.slane %v2367_v17, %v2373_v18 }
 0x20a   : > { %v2172_v58 = vmul.f32 %v2108_v54, %v1916_v6  ;;  %3310 = verf.f32 %v1987_v38 }
 0x20b   : > { %v3301_v23 = vpop.eup %3300  ;;  %v2173_v26 = vmul.f32 %v2109_v19, %v1917_v7  ;;  %v2375_v44 = vcombine.high %v2374_v33, %v2374_v33  ;;  %v2382_v62 = vrot.slane %v2374_v33, %v2373_v18 }
 0x20c   : > { %v3303_v46 = vpop.eup %3302  ;;  %2236 = vst [vmem:[%s4293_s8 + $0x1c0] sm:$0xff] %v2172_v58  ;;  %v2110_v27 = vadd.f32 1.0, %v3301_v23 }
 0x20d   : > { %2237 = vst [vmem:[%s4293_s8 + $0x1c8] sm:$0xff] %v2173_v26  ;;  %v2111_v0 = vadd.f32 1.0, %v3303_v46  ;;  %v2389_v31 = vrot.slane %v2375_v44, %v2373_v18  ;;  %v2390_v29 = vcombine.high %v2382_v62, %v2382_v62  ;;  %2400 = vst.msk [vmem:[%s231_s16] sm:$0x3] %vm4625_vm3, %v2382_v62 }
 0x20e   : > { %v2174_v34 = vmul.f32 %v2110_v27, %v1918_v8 }
 0x20f   : > { %v3305_v48 = vpop.eup %3304  ;;  %v2175_v52 = vmul.f32 %v2111_v0, %v1919_v25  ;;  %v2391_v37 = vcombine.high %v2389_v31, %v2389_v31  ;;  %2401 = vst.msk [vmem:[%s231_s16 + $0x2] sm:$0x3] %vm4625_vm3, %v2389_v31  ;;  %2402 = vst.msk [vmem:[%s231_s16 + $0x4] sm:$0x3] %vm4625_vm3, %v2390_v29 }
 0x210   : > { %v3307_v56 = vpop.eup %3306  ;;  %2238 = vst [vmem:[%s4293_s8 + $0x1d0] sm:$0xff] %v2174_v34  ;;  %v2112_v12 = vadd.f32 1.0, %v3305_v48 }
 0x211   : > { %2239 = vst [vmem:[%s4293_s8 + $0x1d8] sm:$0xff] %v2175_v52  ;;  %v2113_v16 = vadd.f32 1.0, %v3307_v56  ;;  %2403 = vst.msk [vmem:[%s231_s16 + $0x6] sm:$0x3] %vm4625_vm3, %v2391_v37 }
 0x212   : > { %v2176_v60 = vmul.f32 %v2112_v12, %v1920_v39 }
 0x213   : > { %3325 = shalt.err (!%p3322_p3)
}
 0x214   : > { %s3326_s13 = scalar_lea.hbm %s4639_s25, 128  ;;  %s3330_s26 = scalar_lea.hbm %s4738_s5, 256 }
 0x215   : > { %p3327_p4 = scmp.ne.s32.totalorder %s4639_s25, %s3326_s13  ;;  %p3331_p9 = scmp.lt.u32.totalorder %s4639_s25, %s4738_s5 }
 0x216   : > { %p3332_p10 = scmp.lt.u32.totalorder %s3330_s26, %s3326_s13  ;;  %p3334_p12 = scmp.lt.u32.totalorder %s3326_s13, %s4639_s25 }
 0x217   : > { %p3328_p7 = pnand %p3327_p4, %p3484_p5 }
 0x218   : > { %p3333_p11 = por %p3332_p10, %p3331_p9 }
 0x219   : > { %p3329_p8 = pneg %p3328_p7 }
 0x21a   : > { %p3335_p13 = por %p3334_p12, %p3333_p11 }
 0x21c   : > { %p3336_p0 = pnand %p3335_p13, %p3329_p8 }
 0x21e   : > { %3339 = shalt.err (!%p3336_p0)
}
 0x21f   : > { %s3411_s23 = smov 32   ;;  %s3412_s7 = smov 2   ;;  %v3309_v42 = vpop.eup %3308  ;;  %v2177_v63 = vmul.f32 %v2113_v16, %v1921_v43  ;;  %2240 = vst [vmem:[%s4293_s8 + $0x1e0] sm:$0xff] %v2176_v60  ;;  %v1922_v2 = vmul.f32 0.5, %v4612_v9  ;;  %v1923_v4 = vmul.f32 0.5, %v4615_v5 }
 0x220   : > { %3135 = dma.vmem_to_hbm [thread:$0]  (%p3484_p5), %s4641_s17, 128, %s4639_s25, %s2410_s6, %s3411_s23, %s3411_s23, %s3412_s7   ;;  %v3311_v20 = vpop.eup %3310  ;;  %v2114_v47 = vadd.f32 1.0, %v3309_v42 }
 0x221   : > { %s2778_s10 = sshll.u32 %s3467_s22, 13  ;;  %s2424_s11 = sshll.u32 %s4293_s8, 4  ;;  %2241 = vst [vmem:[%s4293_s8 + $0x1e8] sm:$0xff] %v2177_v63  ;;  %v2115_v35 = vadd.f32 1.0, %v3311_v20  ;;  %s4688_s11 = int_to_ptr.vmem [resolvable:$true] %s2424_s11 }
 0x222   : > { %v2178_v51 = vmul.f32 %v2114_v47, %v1922_v2  ;;  %s4686_s25 = scalar_lea.hbm %s4737_s4, %s2778_s10  ;;  %s2405_s22 = scalar_lea.sflag [#allocation3], %s4273_s30 }
 0x223   : > { %v2179_v10 = vmul.f32 %v2115_v35, %v1923_v4  ;;  %s3340_s6 = scalar_lea.vmem %s4688_s11, 8192  ;;  %s3413_s13 = smov [#allocation2]  }
 0x224   : > { %2242 = vst [vmem:[%s4293_s8 + $0x1f0] sm:$0xff] %v2178_v51  ;;  %p3341_p1 = scmp.ne.s32.totalorder %s4688_s11, %s3340_s6  ;;  %s3344_s14 = sshll.u32 %s3413_s13, 4  ;;  %s3345_s14 = int_to_ptr.vmem [resolvable:$false] %s3344_s14 }
 0x225   : > { %2243 = vst [vmem:[%s4293_s8 + $0x1f8] sm:$0xff] %v2179_v10  ;;  %s3346_s15 = scalar_lea.vmem %s3345_s14, 16384  ;;  %p3347_p4 = scmp.lt.s32.totalorder %s4688_s11, %s3345_s14 }
 0x226   : > { %p3342_p2 = pnand %p3341_p1, %p3484_p5  ;;  %p3348_p7 = scmp.lt.s32.totalorder %s3346_s15, %s3340_s6 }
 0x228   : > { %p3343_p3 = pneg %p3342_p2  ;;  %p3349_p8 = por %p3348_p7, %p3347_p4 }
 0x22a   : > { %p3350_p9 = pnand %p3349_p8, %p3343_p3 }
 0x22c   : > { %3353 = shalt.err (!%p3350_p9)
}
 0x22d   : > { %s3354_s8 = scalar_lea.hbm %s4686_s25, 8192  ;;  %s3358_s9 = scalar_lea.hbm %s4737_s4, 16384 }
 0x22e   : > { %p3355_p10 = scmp.ne.s32.totalorder %s4686_s25, %s3354_s8  ;;  %p3359_p13 = scmp.lt.u32.totalorder %s4686_s25, %s4737_s4 }
 0x22f   : > { %p3360_p0 = scmp.lt.u32.totalorder %s3358_s9, %s3354_s8  ;;  %p3362_p2 = scmp.lt.u32.totalorder %s3354_s8, %s4686_s25 }
 0x230   : > { %p3356_p11 = pnand %p3355_p10, %p3484_p5 }
 0x231   : > { %p3361_p1 = por %p3360_p0, %p3359_p13 }
 0x232   : > { %p3357_p12 = pneg %p3356_p11 }
 0x233   : > { %p3363_p3 = por %p3362_p2, %p3361_p1 }
 0x235   : > { %p3364_p4 = pnand %p3363_p3, %p3357_p12 }
 0x237   : > { %3367 = shalt.err (!%p3364_p4)
}
 0x238   : > { %s3414_s10 = smov 256   ;;  %s3415_s12 = smov 16  }
 0x239   : > { %3134 = dma.vmem_to_hbm [thread:$0]  (%p3484_p5), %s4688_s11, 8192, %s4686_s25, %s2405_s22, %s3414_s10, %s3414_s10, %s3415_s12  }
 0x23a PF: > { %p3145_p7 = scmp.ge.s32.totalorder %s3406_s21, 2  ;;  %s2456_s17 = sand.u32 1, %s3394_s18  }
 0x23b   : > { %s2457_s6 = scalar_lea.sflag [#allocation3], %s2456_s17 }
 0x23c   : > { %p3139_p8 = pnand %p3145_p7, %p3488_p6 }
 0x23e   : > { %3385 = dma.done.wait (!%p3139_p8), %s2457_s6, 8192  }
 0x23f   : > { %3387 = vsyncadd (!%p3139_p8), %s2457_s6, 4294959104  ;;  %s2466_s13 = scalar_lea.sflag [#allocation5], %s2456_s17 }
 0x240   : > { %3389 = dma.done.wait (!%p3139_p8), %s2466_s13, 128  }
 0x241   : > { %3391 = vsyncadd (!%p3139_p8), %s2466_s13, 4294967168  ;;  %p19_p5 = scmp.ge.s32.totalorder %s3471_s24, 4   ;;  %s4744_s18 = smov %s3398_s19 }
 0x242   : > { %s4745_s19 = smov %s3402_s20  ;;  %s4746_s20 = smov %s3482_s27 }
 0x243   : > { %s4747_s21 = smov %s3471_s24  ;;  %21 = sbr.rel (!%p19_p5) target bundleno = 5 (0x5), region = 219 }
 0x24a   :  { %2471 = vsyncpa [#allocation3], 1 }
 0x24b   :  { %2473 = vsyncpa [#allocation3 + $0x1], 1 }
 0x24c   :  { %2474 = vsyncpa [#allocation5], 1 }
 0x24d   :  { %2476 = vsyncpa [#allocation5 + $0x1], 1 }

</bundles_post_ra>
